<compile_context>
chip_gen: v7x
topology: tpu7x:2x2x1
jax: 0.10.0
libtpu: 0.0.40
codegen_flags: <defaults>
</compile_context>

<pallas_src>
import functools
import math

import jax
import jax.numpy as jnp
from jax.experimental import pallas as pl
from jax.experimental.pallas import tpu as pltpu


def _round_up(x, m):
    return ((x + m - 1) // m) * m


# ---------------------------------------------------------------------------
# Kernel body: 3 matmuls + biases + 2 LeakyReLUs (BN pre-folded, concat split).
# ---------------------------------------------------------------------------
def _edge_mlp_kernel(src_ref, dst_ref, edge_ref,
                     w1a_ref, w1b_ref, w1c_ref, b1_ref,
                     w2_ref, b2_ref, w3_ref, b3_ref,
                     o_ref, *, slope):
    dot = functools.partial(jnp.dot, preferred_element_type=jnp.float32,
                            precision=jax.lax.Precision.HIGHEST)
    # x @ W1 == src @ W1a + dst @ W1b + edge @ W1c  (no materialized concat)
    h = dot(src_ref[...], w1a_ref[...])
    h = h + dot(dst_ref[...], w1b_ref[...])
    h = h + dot(edge_ref[...], w1c_ref[...])
    h = h + b1_ref[...]
    h = jnp.maximum(h, slope * h)            # LeakyReLU, 0 <= slope <= 1

    h = dot(h, w2_ref[...]) + b2_ref[...]
    h = jnp.maximum(h, slope * h)

    h = dot(h, w3_ref[...]) + b3_ref[...]
    o_ref[...] = h.astype(o_ref.dtype)


def _block_diag(w, k):
    """k copies of w along the diagonal of a (k*r, k*c) matrix."""
    if k == 1:
        return w
    r, c = w.shape
    out = jnp.zeros((k * r, k * c), w.dtype)
    for i in range(k):
        out = out.at[i * r:(i + 1) * r, i * c:(i + 1) * c].set(w)
    return out


def fold_and_pack_params(params, node_in, *, max_pack=16, eps=1e-5):
    """One-time (per parameter set) prep: fold eval-mode BN into the Linears,
    split W1 rows, and build lane-dense block-diagonal packed weights.

    Keeping this out of the forward hot path avoids ~20 tiny XLA dispatches
    per call (review item: hoist folding/packing out of the per-call path).
    """
    edge_out = params["w3"].shape[1]

    def fold_bn(g, b, m, v):
        s = g / jnp.sqrt(v + eps)
        return s, b - m * s

    s1, t1 = fold_bn(params["bn1_g"], params["bn1_b"], params["bn1_m"], params["bn1_v"])
    s2, t2 = fold_bn(params["bn2_g"], params["bn2_b"], params["bn2_m"], params["bn2_v"])
    s3, t3 = fold_bn(params["bn3_g"], params["bn3_b"], params["bn3_m"], params["bn3_v"])

    w1 = s1[:, None] * params["w1"]
    b1 = t1 @ params["w1"] + params["b1"]
    w2 = s2[:, None] * params["w2"]
    b2 = t2 @ params["w2"] + params["b2"]
    w3 = s3[:, None] * params["w3"]
    b3 = t3 @ params["w3"] + params["b3"]

    # split W1 rows -> no HBM concat of [src, dst, edge_attr]
    w1a, w1b, w1c = w1[:node_in], w1[node_in:2 * node_in], w1[2 * node_in:]

    # Lane-dense packing: pack consecutive edges so pack*edge_out % 128 == 0
    # (unmasked vst, 128-wide MXU N).  lcm-based so non-divisor widths like
    # 48/96 still pack.  Cap `pack` (block-diag matmuls do pack x redundant
    # MACs; relevant on v5e's weaker MXU for very small edge_out).
    pack = math.lcm(edge_out, 128) // edge_out if edge_out > 0 else 1
    if pack > max_pack:
        pack = 1      # fall back: correct, but masked partial stores

    return dict(
        w1a=_block_diag(w1a, pack), w1b=_block_diag(w1b, pack),
        w1c=_block_diag(w1c, pack),
        w2=_block_diag(w2, pack), w3=_block_diag(w3, pack),
        b1=jnp.tile(b1.reshape(1, -1), (1, pack)),
        b2=jnp.tile(b2.reshape(1, -1), (1, pack)),
        b3=jnp.tile(b3.reshape(1, -1), (1, pack)),
    )


def edge_model_forward(src, dst, edge_attr, packed, *, leakiness=0.0,
                       tile_edges=4096):
    """Pallas EdgeModel.forward (eval-mode BN).  `packed` comes from
    fold_and_pack_params.  Jit-friendly: all shape logic is trace-time."""
    assert 0.0 <= leakiness <= 1.0
    n, node_in = src.shape
    edge_in = edge_attr.shape[1]
    # pack / edge_out are recovered from static shapes (keeps them Python ints
    # even when `packed` is a traced pytree under jit).
    pack = packed["w1a"].shape[0] // node_in
    edge_out = packed["w1a"].shape[1] // pack

    # ---- tile sizing (memory-bound: big tiles; >=2 grid steps for v7x) ----
    min_tile = 8 * pack                              # sublane-aligned after packing
    n_min = _round_up(n, min_tile)                   # smallest legal padded size
    tile = max(min_tile, (min(tile_edges, n_min) // min_tile) * min_tile)
    if tile >= n_min and n_min >= 2 * min_tile:
        # grid would collapse to 1 step; split in two so both v7x TCs get work
        tile = _round_up(-(-n_min // 2), min_tile)
    n_pad = _round_up(n, tile)
    if n_pad != n:
        padcfg = ((0, n_pad - n), (0, 0))
        src = jnp.pad(src, padcfg)
        dst = jnp.pad(dst, padcfg)
        edge_attr = jnp.pad(edge_attr, padcfg)

    rows = n_pad // pack
    tile_rows = tile // pack

    # zero-cost row-major reshapes: `pack` consecutive edges per 128-lane row
    src_p = src.reshape(rows, pack * node_in)
    dst_p = dst.reshape(rows, pack * node_in)
    edge_p = edge_attr.reshape(rows, pack * edge_in)

    grid = (rows // tile_rows,)

    # ---- VMEM budget (lane-padded, double-buffered) & cost estimate ----
    lane = lambda c: _round_up(c, 128)
    bytes_per_row = 4 * (2 * lane(pack * node_in) + lane(pack * edge_in)
                         + lane(pack * edge_out))
    weight_bytes = 4 * sum(int(v.size) for v in packed.values())
    vmem_est = 2 * tile_rows * bytes_per_row + 2 * weight_bytes
    # Only raise the scoped-VMEM limit when a big tile actually needs it
    # (v5e's default scoped limit is 16 MiB); cap at 64 MiB (v7x physical).
    vmem_limit = int(min(2 * vmem_est, 64 << 20)) if vmem_est > (12 << 20) else None

    in_dim = 2 * node_in + edge_in
    flops = 2 * n_pad * pack * edge_out * (in_dim + 2 * edge_out)
    bytes_accessed = 4 * n_pad * (in_dim + edge_out) + weight_bytes
    cost = pl.CostEstimate(flops=int(flops), transcendentals=0,
                           bytes_accessed=int(bytes_accessed))

    full = lambda a: pl.BlockSpec(a.shape, lambda i: (0, 0))
    kernel = functools.partial(_edge_mlp_kernel, slope=float(leakiness))

    out_p = pl.pallas_call(
        kernel,
        out_shape=jax.ShapeDtypeStruct((rows, pack * edge_out), jnp.float32),
        grid_spec=pltpu.PrefetchScalarGridSpec(
            num_scalar_prefetch=0,
            grid=grid,
            in_specs=[
                pl.BlockSpec((tile_rows, pack * node_in), lambda i: (i, 0)),   # src
                pl.BlockSpec((tile_rows, pack * node_in), lambda i: (i, 0)),   # dst
                pl.BlockSpec((tile_rows, pack * edge_in), lambda i: (i, 0)),   # edge
                full(packed["w1a"]), full(packed["w1b"]), full(packed["w1c"]),
                full(packed["b1"]),
                full(packed["w2"]), full(packed["b2"]),
                full(packed["w3"]), full(packed["b3"]),
            ],
            out_specs=pl.BlockSpec((tile_rows, pack * edge_out), lambda i: (i, 0)),
        ),
        compiler_params=pltpu.CompilerParams(
            dimension_semantics=("parallel",),
            vmem_limit_bytes=vmem_limit),
        cost_estimate=cost,
    )(src_p, dst_p, edge_p,
      packed["w1a"], packed["w1b"], packed["w1c"], packed["b1"],
      packed["w2"], packed["b2"], packed["w3"], packed["b3"])

    # unpack back to (N, edge_out) and drop padded edges
    return out_p.reshape(n_pad, edge_out)[:n]


# ---------------------------------------------------------------------------
# Synthetic params + pure-JAX reference (validation only).
# ---------------------------------------------------------------------------
def init_params(key, node_in, edge_in, edge_out):
    in_dim = 2 * node_in + edge_in
    ks = jax.random.split(key, 15)

    def linear(kw, kb, fan_in, fan_out):
        bound = 1.0 / jnp.sqrt(fan_in)
        # stored as (in, out) == PyTorch weight (out, in) transposed
        w = jax.random.uniform(kw, (fan_in, fan_out), jnp.float32, -bound, bound)
        b = jax.random.uniform(kb, (fan_out,), jnp.float32, -bound, bound)
        return w, b

    def bn(kg, kb, km, dim):
        g = 1.0 + 0.1 * jax.random.normal(kg, (dim,), jnp.float32)
        b = 0.1 * jax.random.normal(kb, (dim,), jnp.float32)
        m = 0.05 * jax.random.normal(km, (dim,), jnp.float32)
        v = jnp.ones((dim,), jnp.float32)
        return g, b, m, v

    w1, b1 = linear(ks[0], ks[1], in_dim, edge_out)
    w2, b2 = linear(ks[2], ks[3], edge_out, edge_out)
    w3, b3 = linear(ks[4], ks[5], edge_out, edge_out)
    bn1_g, bn1_b, bn1_m, bn1_v = bn(ks[6], ks[7], ks[8], in_dim)
    bn2_g, bn2_b, bn2_m, bn2_v = bn(ks[9], ks[10], ks[11], edge_out)
    bn3_g, bn3_b, bn3_m, bn3_v = bn(ks[12], ks[13], ks[14], edge_out)

    return dict(w1=w1, b1=b1, w2=w2, b2=b2, w3=w3, b3=b3,
                bn1_g=bn1_g, bn1_b=bn1_b, bn1_m=bn1_m, bn1_v=bn1_v,
                bn2_g=bn2_g, bn2_b=bn2_b, bn2_m=bn2_m, bn2_v=bn2_v,
                bn3_g=bn3_g, bn3_b=bn3_b, bn3_m=bn3_m, bn3_v=bn3_v)


def edge_model_reference(src, dst, edge_attr, p, leakiness=0.0, eps=1e-5):
    """Pure-JAX reference of the PyTorch module (eval-mode BN), full precision."""
    x = jnp.concatenate([src, dst, edge_attr], axis=1)
    mm = functools.partial(jnp.dot, precision=jax.lax.Precision.HIGHEST)

    def bn(x, g, b, m, v):
        return (x - m) / jnp.sqrt(v + eps) * g + b

    def lrelu(x):
        return jnp.maximum(x, leakiness * x)

    h = bn(x, p["bn1_g"], p["bn1_b"], p["bn1_m"], p["bn1_v"])
    h = lrelu(mm(h, p["w1"]) + p["b1"])
    h = bn(h, p["bn2_g"], p["bn2_b"], p["bn2_m"], p["bn2_v"])
    h = lrelu(mm(h, p["w2"]) + p["b2"])
    h = bn(h, p["bn3_g"], p["bn3_b"], p["bn3_m"], p["bn3_v"])
    return mm(h, p["w3"]) + p["b3"]


if __name__ == "__main__":
    # Small shapes: N_edges=64, node_in=12, edge_in=8, edge_out=32
    N, NODE_IN, EDGE_IN, EDGE_OUT = 64, 12, 8, 32
    LEAKINESS = 0.1

    key = jax.random.PRNGKey(0)
    k_src, k_dst, k_edge, k_par = jax.random.split(key, 4)

    src = jax.random.normal(k_src, (N, NODE_IN), jnp.float32)
    dst = jax.random.normal(k_dst, (N, NODE_IN), jnp.float32)
    edge_attr = jax.random.normal(k_edge, (N, EDGE_IN), jnp.float32)
    params = init_params(k_par, NODE_IN, EDGE_IN, EDGE_OUT)

    # One-time BN fold + lane-dense packing; the jitted forward is the hot path.
    packed = fold_and_pack_params(params, NODE_IN)
    fwd = jax.jit(functools.partial(edge_model_forward, leakiness=LEAKINESS))

    out = jax.block_until_ready(fwd(src, dst, edge_attr, packed))

    ref = edge_model_reference(src, dst, edge_attr, params, leakiness=LEAKINESS)
    assert out.shape == (N, EDGE_OUT)
    # Kernel matmuls run at Precision.HIGHEST -> tight tolerance is valid
    # (residual difference is only BN-folding rounding order).
    assert jnp.allclose(out, ref, atol=1e-4, rtol=1e-4), "mismatch vs JAX reference"

    print("KERNEL_OK")
</pallas_src>

<mosaic_0001>
module attributes {stable_mosaic.version = 11 : i64} {
  func.func @_edge_mlp_kernel(%arg0: i32, %arg1: memref<8x48xf32, #tpu.memory_space<vmem>>, %arg2: memref<8x48xf32, #tpu.memory_space<vmem>>, %arg3: memref<8x32xf32, #tpu.memory_space<vmem>>, %arg4: memref<48x128xf32, #tpu.memory_space<vmem>>, %arg5: memref<48x128xf32, #tpu.memory_space<vmem>>, %arg6: memref<32x128xf32, #tpu.memory_space<vmem>>, %arg7: memref<1x128xf32, #tpu.memory_space<vmem>>, %arg8: memref<128x128xf32, #tpu.memory_space<vmem>>, %arg9: memref<1x128xf32, #tpu.memory_space<vmem>>, %arg10: memref<128x128xf32, #tpu.memory_space<vmem>>, %arg11: memref<1x128xf32, #tpu.memory_space<vmem>>, %arg12: memref<8x128xf32, #tpu.memory_space<vmem>>) attributes {dimension_semantics = [#tpu.dimension_semantics<parallel>], iteration_bounds = array<i64: 2>, scalar_prefetch = 0 : i64, scratch_operands = 0 : i64, tpu.core_type = #tpu.core_type<tc>, window_params = [{transform_indices = @transform_0, window_bounds = array<i64: 8, 48>}, {transform_indices = @transform_1, window_bounds = array<i64: 8, 48>}, {transform_indices = @transform_2, window_bounds = array<i64: 8, 32>}, {pipeline_mode = #tpu.pipeline_mode<synchronous>, transform_indices = @transform_3, window_bounds = array<i64: 48, 128>}, {pipeline_mode = #tpu.pipeline_mode<synchronous>, transform_indices = @transform_4, window_bounds = array<i64: 48, 128>}, {pipeline_mode = #tpu.pipeline_mode<synchronous>, transform_indices = @transform_5, window_bounds = array<i64: 32, 128>}, {pipeline_mode = #tpu.pipeline_mode<synchronous>, transform_indices = @transform_6, window_bounds = array<i64: 1, 128>}, {pipeline_mode = #tpu.pipeline_mode<synchronous>, transform_indices = @transform_7, window_bounds = array<i64: 128, 128>}, {pipeline_mode = #tpu.pipeline_mode<synchronous>, transform_indices = @transform_8, window_bounds = array<i64: 1, 128>}, {pipeline_mode = #tpu.pipeline_mode<synchronous>, transform_indices = @transform_9, window_bounds = array<i64: 128, 128>}, {pipeline_mode = #tpu.pipeline_mode<synchronous>, transform_indices = @transform_10, window_bounds = array<i64: 1, 128>}, {transform_indices = @transform_11, window_bounds = array<i64: 8, 128>}]} {
    %c0 = arith.constant 0 : index
    %c0_0 = arith.constant 0 : index
    %0 = vector.load %arg1[%c0, %c0_0] : memref<8x48xf32, #tpu.memory_space<vmem>>, vector<8x48xf32>
    %c0_1 = arith.constant 0 : index
    %c0_2 = arith.constant 0 : index
    %1 = vector.load %arg4[%c0_1, %c0_2] : memref<48x128xf32, #tpu.memory_space<vmem>>, vector<48x128xf32>
    %cst = arith.constant dense<0.000000e+00> : vector<8x128xf32>
    %2 = tpu.matmul %0, %1, %cst {dimension_numbers = #tpu.dot_dimension_numbers<[1], [0], [0], [1], [0, 0, 1, 1], [], []>, precision = #tpu.contract_precision<fp32>} : vector<8x48xf32>, vector<48x128xf32>, vector<8x128xf32> -> vector<8x128xf32>
    %c0_3 = arith.constant 0 : index
    %c0_4 = arith.constant 0 : index
    %3 = vector.load %arg2[%c0_3, %c0_4] : memref<8x48xf32, #tpu.memory_space<vmem>>, vector<8x48xf32>
    %c0_5 = arith.constant 0 : index
    %c0_6 = arith.constant 0 : index
    %4 = vector.load %arg5[%c0_5, %c0_6] : memref<48x128xf32, #tpu.memory_space<vmem>>, vector<48x128xf32>
    %cst_7 = arith.constant dense<0.000000e+00> : vector<8x128xf32>
    %5 = tpu.matmul %3, %4, %cst_7 {dimension_numbers = #tpu.dot_dimension_numbers<[1], [0], [0], [1], [0, 0, 1, 1], [], []>, precision = #tpu.contract_precision<fp32>} : vector<8x48xf32>, vector<48x128xf32>, vector<8x128xf32> -> vector<8x128xf32>
    %6 = arith.addf %2, %5 : vector<8x128xf32>
    %c0_8 = arith.constant 0 : index
    %c0_9 = arith.constant 0 : index
    %7 = vector.load %arg3[%c0_8, %c0_9] : memref<8x32xf32, #tpu.memory_space<vmem>>, vector<8x32xf32>
    %c0_10 = arith.constant 0 : index
    %c0_11 = arith.constant 0 : index
    %8 = vector.load %arg6[%c0_10, %c0_11] : memref<32x128xf32, #tpu.memory_space<vmem>>, vector<32x128xf32>
    %cst_12 = arith.constant dense<0.000000e+00> : vector<8x128xf32>
    %9 = tpu.matmul %7, %8, %cst_12 {dimension_numbers = #tpu.dot_dimension_numbers<[1], [0], [0], [1], [0, 0, 1, 1], [], []>, precision = #tpu.contract_precision<fp32>} : vector<8x32xf32>, vector<32x128xf32>, vector<8x128xf32> -> vector<8x128xf32>
    %10 = arith.addf %6, %9 : vector<8x128xf32>
    %c0_13 = arith.constant 0 : index
    %c0_14 = arith.constant 0 : index
    %11 = vector.load %arg7[%c0_13, %c0_14] : memref<1x128xf32, #tpu.memory_space<vmem>>, vector<1x128xf32>
    %12 = vector.broadcast %11 : vector<1x128xf32> to vector<8x128xf32>
    %13 = arith.addf %10, %12 : vector<8x128xf32>
    %cst_15 = arith.constant 1.000000e-01 : f32
    %14 = vector.broadcast %cst_15 : f32 to vector<8x128xf32>
    %15 = arith.mulf %14, %13 : vector<8x128xf32>
    %16 = arith.maximumf %13, %15 : vector<8x128xf32>
    %c0_16 = arith.constant 0 : index
    %c0_17 = arith.constant 0 : index
    %17 = vector.load %arg8[%c0_16, %c0_17] : memref<128x128xf32, #tpu.memory_space<vmem>>, vector<128x128xf32>
    %cst_18 = arith.constant dense<0.000000e+00> : vector<8x128xf32>
    %18 = tpu.matmul %16, %17, %cst_18 {dimension_numbers = #tpu.dot_dimension_numbers<[1], [0], [0], [1], [0, 0, 1, 1], [], []>, precision = #tpu.contract_precision<fp32>} : vector<8x128xf32>, vector<128x128xf32>, vector<8x128xf32> -> vector<8x128xf32>
    %c0_19 = arith.constant 0 : index
    %c0_20 = arith.constant 0 : index
    %19 = vector.load %arg9[%c0_19, %c0_20] : memref<1x128xf32, #tpu.memory_space<vmem>>, vector<1x128xf32>
    %20 = vector.broadcast %19 : vector<1x128xf32> to vector<8x128xf32>
    %21 = arith.addf %18, %20 : vector<8x128xf32>
    %cst_21 = arith.constant 1.000000e-01 : f32
    %22 = vector.broadcast %cst_21 : f32 to vector<8x128xf32>
    %23 = arith.mulf %22, %21 : vector<8x128xf32>
    %24 = arith.maximumf %21, %23 : vector<8x128xf32>
    %c0_22 = arith.constant 0 : index
    %c0_23 = arith.constant 0 : index
    %25 = vector.load %arg10[%c0_22, %c0_23] : memref<128x128xf32, #tpu.memory_space<vmem>>, vector<128x128xf32>
    %cst_24 = arith.constant dense<0.000000e+00> : vector<8x128xf32>
    %26 = tpu.matmul %24, %25, %cst_24 {dimension_numbers = #tpu.dot_dimension_numbers<[1], [0], [0], [1], [0, 0, 1, 1], [], []>, precision = #tpu.contract_precision<fp32>} : vector<8x128xf32>, vector<128x128xf32>, vector<8x128xf32> -> vector<8x128xf32>
    %c0_25 = arith.constant 0 : index
    %c0_26 = arith.constant 0 : index
    %27 = vector.load %arg11[%c0_25, %c0_26] : memref<1x128xf32, #tpu.memory_space<vmem>>, vector<1x128xf32>
    %28 = vector.broadcast %27 : vector<1x128xf32> to vector<8x128xf32>
    %29 = arith.addf %26, %28 : vector<8x128xf32>
    %c0_27 = arith.constant 0 : index
    %c0_28 = arith.constant 0 : index
    %30 = vector.load %arg12[%c0_27, %c0_28] : memref<8x128xf32, #tpu.memory_space<vmem>>, vector<8x128xf32>
    tpu.vector_store %arg12[%c0_27, %c0_28], %29 {strides = array<i32>} : memref<8x128xf32, #tpu.memory_space<vmem>>, vector<8x128xf32>,
    return
  }
  func.func @transform_0(%arg0: i32) -> (i32, i32) {
    %c0_i32 = arith.constant 0 : i32
    %c0_i32_0 = arith.constant 0 : i32
    return %arg0, %c0_i32 : i32, i32
  }
  func.func @transform_1(%arg0: i32) -> (i32, i32) {
    %c0_i32 = arith.constant 0 : i32
    %c0_i32_0 = arith.constant 0 : i32
    return %arg0, %c0_i32 : i32, i32
  }
  func.func @transform_2(%arg0: i32) -> (i32, i32) {
    %c0_i32 = arith.constant 0 : i32
    %c0_i32_0 = arith.constant 0 : i32
    return %arg0, %c0_i32 : i32, i32
  }
  func.func @transform_3(%arg0: i32) -> (i32, i32) {
    %c0_i32 = arith.constant 0 : i32
    %c0_i32_0 = arith.constant 0 : i32
    %c0_i32_1 = arith.constant 0 : i32
    return %c0_i32, %c0_i32_0 : i32, i32
  }
  func.func @transform_4(%arg0: i32) -> (i32, i32) {
    %c0_i32 = arith.constant 0 : i32
    %c0_i32_0 = arith.constant 0 : i32
    %c0_i32_1 = arith.constant 0 : i32
    return %c0_i32, %c0_i32_0 : i32, i32
  }
  func.func @transform_5(%arg0: i32) -> (i32, i32) {
    %c0_i32 = arith.constant 0 : i32
    %c0_i32_0 = arith.constant 0 : i32
    %c0_i32_1 = arith.constant 0 : i32
    return %c0_i32, %c0_i32_0 : i32, i32
  }
  func.func @transform_6(%arg0: i32) -> (i32, i32) {
    %c0_i32 = arith.constant 0 : i32
    %c0_i32_0 = arith.constant 0 : i32
    %c0_i32_1 = arith.constant 0 : i32
    return %c0_i32, %c0_i32_0 : i32, i32
  }
  func.func @transform_7(%arg0: i32) -> (i32, i32) {
    %c0_i32 = arith.constant 0 : i32
    %c0_i32_0 = arith.constant 0 : i32
    %c0_i32_1 = arith.constant 0 : i32
    return %c0_i32, %c0_i32_0 : i32, i32
  }
  func.func @transform_8(%arg0: i32) -> (i32, i32) {
    %c0_i32 = arith.constant 0 : i32
    %c0_i32_0 = arith.constant 0 : i32
    %c0_i32_1 = arith.constant 0 : i32
    return %c0_i32, %c0_i32_0 : i32, i32
  }
  func.func @transform_9(%arg0: i32) -> (i32, i32) {
    %c0_i32 = arith.constant 0 : i32
    %c0_i32_0 = arith.constant 0 : i32
    %c0_i32_1 = arith.constant 0 : i32
    return %c0_i32, %c0_i32_0 : i32, i32
  }
  func.func @transform_10(%arg0: i32) -> (i32, i32) {
    %c0_i32 = arith.constant 0 : i32
    %c0_i32_0 = arith.constant 0 : i32
    %c0_i32_1 = arith.constant 0 : i32
    return %c0_i32, %c0_i32_0 : i32, i32
  }
  func.func @transform_11(%arg0: i32) -> (i32, i32) {
    %c0_i32 = arith.constant 0 : i32
    %c0_i32_0 = arith.constant 0 : i32
    return %arg0, %c0_i32 : i32, i32
  }
}

</mosaic_0001>

<bundles_post_ra>
// kernel: edge_model_forward.1
= control target key start
LH: loop header
LB: loop body
LE: loop exit
PB: predicated region body
PF: predicated region fallthrough
CT: control target
= control target key end

     0   :  { %s4906_s17 = smov 0   ;;  %s5931_s0 = inlined_call_operand.vmem [shape: f32[16,48], index: 0, kind: input, shape index: {}]   ;;  %s5932_s1 = inlined_call_operand.vmem [shape: f32[16,48], index: 1, kind: input, shape index: {}]   ;;  %s5933_s2 = inlined_call_operand.vmem [shape: f32[16,32], index: 2, kind: input, shape index: {}]   ;;  %s5934_s3 = inlined_call_operand.vmem [shape: f32[48,128], index: 3, kind: input, shape index: {}]   ;;  %s5935_s4 = inlined_call_operand.vmem [shape: f32[48,128], index: 4, kind: input, shape index: {}]   ;;  %s5936_s5 = inlined_call_operand.vmem [shape: f32[32,128], index: 5, kind: input, shape index: {}]   ;;  %s5937_s6 = inlined_call_operand.vmem [shape: f32[1,128], index: 6, kind: input, shape index: {}]   ;;  %s5938_s7 = inlined_call_operand.vmem [shape: f32[128,128], index: 7, kind: input, shape index: {}]   ;;  %s5939_s8 = inlined_call_operand.vmem [shape: f32[1,128], index: 8, kind: input, shape index: {}]   ;;  %s5940_s9 = inlined_call_operand.vmem [shape: f32[128,128], index: 9, kind: input, shape index: {}]   ;;  %s5941_s10 = inlined_call_operand.vmem [shape: f32[1,128], index: 10, kind: input, shape index: {}]   ;;  %s5942_s11 = inlined_call_operand.vmem [shape: f32[16,128], index: 11, kind: output, shape index: {}]  }
   0x1 LB: > { %s3372_s18 = sadd.s32 4294967295, %s4841_s17   ;;  %p3376_p0 = scmp.ge.s32.totalorder %s4841_s17, 1  ;;  %s4841_s17 = sphi %s4906_s17, %s21_s17  }
   0x2   : > { %p354_p1 = scmp.lt.s32.totalorder %s4841_s17, 3 }
   0x4   : > { %p355_p2 = pnand %p3376_p0, %p354_p1 }
   0x5   : > { %v424_v0 = vld [vmem:[%s5935_s4] sm:$0xff] (!%p355_p2)  ;;  %v425_v1 = vld [vmem:[%s5935_s4 + $0x8] sm:$0xff] (!%p355_p2)  ;;  %v426_v2 = vld [vmem:[%s5935_s4 + $0x10] sm:$0xff] (!%p355_p2)  ;;  %v4843_v3 = vmov (!%p355_p2), 0.0|0.0   ;;  %vm4844_vm0 = vmmov (!%p355_p2), 0   ;;  %v4845_v13 = vmov (!%p355_p2), 0.0  }
   0x6   : > { %358 = sbr.rel (%p355_p2) target bundleno = 1109 (0x455), region = 64  ;;  %4370 = vmatprep.subr.bf16.mxu0 (!%p355_p2), %v4843_v3  ;;  %v435_v4 = vand.u32 (!%p355_p2), 4294901760, %v424_v0  ;;  %v438_v5 = vand.u32 (!%p355_p2), 4294901760, %v425_v1  ;;  %v427_v6 = vld [vmem:[%s5935_s4 + $0x18] sm:$0xff] (!%p355_p2)  ;;  %v441_v7 = vand.u32 (!%p355_p2), 4294901760, %v426_v2  ;;  %4379 = vmatprep.subr.bf16.mxu1 (!%p355_p2), %v4843_v3  ;;  %v428_v8 = vld [vmem:[%s5935_s4 + $0x20] sm:$0xff] (!%p355_p2) }
   0x7   : > { %v429_v9 = vld [vmem:[%s5935_s4 + $0x28] sm:$0xff] (!%p355_p2)  ;;  %v444_v10 = vand.u32 (!%p355_p2), 4294901760, %v427_v6  ;;  %v447_v11 = vand.u32 (!%p355_p2), 4294901760, %v428_v8  ;;  %3716 = vmatprep.mubr.msk.f32.mxu0 (!%p355_p2), %vm4844_vm0, %v4845_v13  ;;  %p400_p3 = scmp.lt.s32.totalorder (!%p355_p2), %s3372_s18, 1  ;;  %3731 = vmatprep.mubr.msk.f32.mxu1 (!%p355_p2), %vm4844_vm0, %v4845_v13  ;;  %vm430_vm1 = vcmask (!%p355_p2), 392192   ;;  %v417_v53 = vld [vmem:[%s5934_s3] sm:$0xff] (!%p355_p2) }
   0x8   : > { %v450_v12 = vand.u32 (!%p355_p2), 4294901760, %v429_v9  ;;  %v4940_v14 = vpack.c.bf16 (!%p355_p2), %v438_v5, %v435_v4  ;;  %v4942_v15 = vsub.f32 (!%p355_p2), %v424_v0, %v435_v4  ;;  %v4944_v16 = vsub.f32 (!%p355_p2), %v425_v1, %v438_v5  ;;  %v418_v54 = vld [vmem:[%s5934_s3 + $0x8] sm:$0xff] (!%p355_p2)  ;;  %v419_v58 = vld [vmem:[%s5934_s3 + $0x10] sm:$0xff] (!%p355_p2)  ;;  %v420_v59 = vld [vmem:[%s5934_s3 + $0x18] sm:$0xff] (!%p355_p2) }
   0x9   : > { %v4946_v17 = vsub.f32 (!%p355_p2), %v426_v2, %v441_v7  ;;  %v4948_v18 = vpack.c.bf16 (!%p355_p2), %v444_v10, %v441_v7  ;;  %v4950_v19 = vsub.f32 (!%p355_p2), %v427_v6, %v444_v10  ;;  %v4952_v20 = vsub.f32 (!%p355_p2), %v428_v8, %v447_v11  ;;  %v421_v2 = vld [vmem:[%s5934_s3 + $0x20] sm:$0xff] (!%p355_p2)  ;;  %v422_v4 = vld [vmem:[%s5934_s3 + $0x28] sm:$0xff] (!%p355_p2) }
   0xa   : > { %4372 = vmatpush3.bf16.msra.mxu0 (!%p355_p2), %v4940_v14  ;;  %v518_v21 = vand.u32 (!%p355_p2), 4294901760, %v4942_v15  ;;  %v525_v22 = vand.u32 (!%p355_p2), 4294901760, %v4944_v16  ;;  %v4959_v23 = vsub.f32 (!%p355_p2), %v429_v9, %v450_v12  ;;  %v4981_v31 = vpack.c.bf16 (!%p355_p2), %v450_v12, %v447_v11 }
   0xb   : > { %v532_v24 = vand.u32 (!%p355_p2), 4294901760, %v4946_v17  ;;  %4373 = vmatprep.subr.bf16.mxu0 (!%p355_p2), %v4843_v3  ;;  %v539_v25 = vand.u32 (!%p355_p2), 4294901760, %v4950_v19  ;;  %v546_v26 = vand.u32 (!%p355_p2), 4294901760, %v4952_v20  ;;  %v4389_v49 = vpack.c.bf16 (!%p355_p2), %v4944_v16, %v4942_v15 }
   0xc   : > { %v519_v27 = vsub.f32 (!%p355_p2), %v4942_v15, %v518_v21  ;;  %v526_v28 = vsub.f32 (!%p355_p2), %v4944_v16, %v525_v22  ;;  %v553_v30 = vand.u32 (!%p355_p2), 4294901760, %v4959_v23  ;;  %v4392_v52 = vpack.c.bf16 (!%p355_p2), %v4950_v19, %v4946_v17 }
   0xd   : > { %s5986_s18 = smov (!%p400_p3, %s3372_s18), 1  ;;  %v533_v29 = vsub.f32 %v4946_v17, %v532_v24  ;;  %v540_v32 = vsub.f32 %v4950_v19, %v539_v25  ;;  %v547_v34 = vsub.f32 %v4952_v20, %v546_v26  ;;  %v949_v55 = vand.u32 4294901760, %v417_v53 }
   0xe   : > { %s4964_s12 = sshll.u32 %s5986_s18, 3  ;;  %4375 = vmatpush3.bf16.msra.mxu0 %v4948_v18  ;;  %v520_v35 = vand.u32 4294901760, %v519_v27  ;;  %v527_v36 = vand.u32 4294901760, %v526_v28  ;;  %v554_v42 = vsub.f32 %v4959_v23, %v553_v30  ;;  %v4395_v56 = vpack.c.bf16 %v4959_v23, %v4952_v20 }
   0xf   : > { %s407_s15 = scalar_lea.vmem %s5932_s1, %s4964_s12  ;;  %v534_v37 = vand.u32 4294901760, %v533_v29  ;;  %4376 = vmatprep.subr.bf16.mxu0 %v4843_v3  ;;  %v541_v39 = vand.u32 4294901760, %v540_v32  ;;  %v548_v45 = vand.u32 4294901760, %v547_v34  ;;  %v952_v57 = vand.u32 4294901760, %v418_v54  ;;  %s403_s23 = scalar_lea.vmem %s5931_s0, %s4964_s12 }
  0x10   : > { %v423_v33 = vld [vmem:[%s407_s15] sm:$0xff]  ;;  %v4380_v41 = vpack.c.bf16 %v527_v36, %v520_v35  ;;  %v555_v46 = vand.u32 4294901760, %v554_v42  ;;  %v5038_v60 = vsub.f32 %v417_v53, %v949_v55  ;;  %v4407_v62 = vpack.c.bf16 %v525_v22, %v518_v21  ;;  %s411_s21 = scalar_lea.vmem %s5933_s2, %s4964_s12  ;;  %s415_s30 = scalar_lea.vmem %s5942_s11, %s4964_s12 }
  0x11   : > { %v432_v38 = vsel %vm430_vm1, %v423_v33, 0  ;;  %v4383_v44 = vpack.c.bf16 %v541_v39, %v534_v37  ;;  %v416_v61 = vld [vmem:[%s403_s23] sm:$0xff]  ;;  %v5045_v63 = vsub.f32 %v418_v54, %v952_v57  ;;  %v955_v0 = vand.u32 4294901760, %v419_v58 }
  0x12   : > { %v4992_v40 = vand.u32 4294901760, %v432_v38  ;;  %4381 = vmatpush3.bf16.msra.mxu1 %v4380_v41  ;;  %4378 = vmatpush3.bf16.msra.mxu0 %v4981_v31  ;;  %v4386_v50 = vpack.c.bf16 %v555_v46, %v548_v45  ;;  %v958_v1 = vand.u32 4294901760, %v420_v59  ;;  %v946_v5 = vsel %vm430_vm1, %v416_v61, 0  ;;  %v1460_v46 = vld [vmem:[%s5936_s5] sm:$0xff] }
  0x13   : > { %4382 = vmatprep.subr.bf16.mxu1 %v4843_v3  ;;  %4388 = vmatprep.subr.bf16.mxu0 %v4843_v3  ;;  %v4410_v6 = vpack.c.bf16 %v539_v25, %v532_v24  ;;  %v1032_v7 = vand.u32 4294901760, %v5038_v60  ;;  %v961_v8 = vand.u32 4294901760, %v421_v2  ;;  %v5063_v9 = vsub.f32 %v419_v58, %v955_v0  ;;  %v1459_v53 = vld [vmem:[%s411_s21] sm:$0xff] }
  0x14   : > { %v4998_v43 = vsub.f32 %v432_v38, %v4992_v40  ;;  %v5065_v10 = vsub.f32 %v420_v59, %v958_v1  ;;  %v1039_v11 = vand.u32 4294901760, %v5045_v63  ;;  %v964_v12 = vand.u32 4294901760, %v422_v4 }
  0x15   : > { %v5072_v15 = vand.u32 4294901760, %v946_v5  ;;  %v4413_v16 = vpack.c.bf16 %v553_v30, %v546_v26  ;;  %v1033_v17 = vsub.f32 %v5038_v60, %v1032_v7  ;;  %v5081_v19 = vsub.f32 %v421_v2, %v961_v8 }
  0x16   : > { %v507_v47 = vand.u32 4294901760, %v4998_v43  ;;  %4384 = vmatpush3.bf16.msra.mxu1 %v4383_v44  ;;  %v1040_v21 = vsub.f32 %v5045_v63, %v1039_v11  ;;  %v5087_v22 = vsub.f32 %v422_v4, %v964_v12  ;;  %v1046_v20 = vand.u32 4294901760, %v5063_v9 }
  0x17   : > { %4385 = vmatprep.subr.bf16.mxu1 %v4843_v3  ;;  %v1053_v23 = vand.u32 4294901760, %v5065_v10  ;;  %v5095_v24 = vpack.c.bf16 %v952_v57, %v949_v55  ;;  %v5098_v25 = vsub.f32 %v946_v5, %v5072_v15  ;;  %v1060_v26 = vand.u32 4294901760, %v5081_v19 }
  0x18   : > { %v508_v48 = vsub.f32 %v4998_v43, %v507_v47  ;;  %v1041_v27 = vand.u32 4294901760, %v1040_v21  ;;  %v1047_v28 = vsub.f32 %v5063_v9, %v1046_v20  ;;  %v1067_v30 = vand.u32 4294901760, %v5087_v22 }
  0x19   : > { %v1054_v29 = vsub.f32 %v5065_v10, %v1053_v23  ;;  %v5112_v32 = vpack.c.bf16 %v958_v1, %v955_v0  ;;  %v1061_v33 = vsub.f32 %v5081_v19, %v1060_v26  ;;  %v5132_v38 = vpack.c.bf16 %v964_v12, %v961_v8 }
  0x1a   : > { %v509_v51 = vand.u32 4294901760, %v508_v48  ;;  %4387 = vmatpush3.bf16.msra.mxu1 %v4386_v50  ;;  %v1048_v35 = vand.u32 4294901760, %v1047_v28  ;;  %v1068_v37 = vsub.f32 %v5087_v22, %v1067_v30  ;;  %v4446_v45 = vpack.c.bf16 %v5065_v10, %v5063_v9  ;;  %v1964_v28 = vld [vmem:[%s5938_s7] sm:$0xff] }
  0x1b   : > { %4397 = vmatprep.subr.bf16.mxu1 %v4843_v3  ;;  %v1055_v36 = vand.u32 4294901760, %v1054_v29  ;;  %v1062_v41 = vand.u32 4294901760, %v1061_v33  ;;  %v4449_v48 = vpack.c.bf16 %v5087_v22, %v5081_v19  ;;  %vm1464_vm2 = vcmask 261120   ;;  %v1965_v29 = vld [vmem:[%s5938_s7 + $0x8] sm:$0xff] }
  0x1c   : > { %3717 = vmatmul.mubr.f32.vlgmr.msra.gmra.mrb[0].mxu0 %v509_v51  ;;  %v1069_v42 = vand.u32 4294901760, %v1068_v37  ;;  %v1462_v51 = vld [vmem:[%s5936_s5 + $0x10] sm:$0xff]  ;;  %v4461_v54 = vpack.c.bf16 %v1039_v11, %v1032_v7  ;;  %v1466_v59 = vsel %vm1464_vm2, %v1459_v53, 0  ;;  %v4467_v2 = vpack.c.bf16 %v1067_v30, %v1060_v26  ;;  %v1972_v53 = vld [vmem:[%s5938_s7 + $0x40] sm:$0xff] }
  0x1d   : > { %4390 = vmatpush3.bf16.msra.mxu0 %v4389_v49  ;;  %3746 = vmatprep.mubr.msk.f32.mxu0 %vm4844_vm0, %v4845_v13  ;;  %v4437_v39 = vpack.c.bf16 %v1055_v36, %v1048_v35  ;;  %v1469_v49 = vand.u32 4294901760, %v1460_v46  ;;  %v1475_v55 = vand.u32 4294901760, %v1462_v51  ;;  %v5189_v61 = vand.u32 4294901760, %v1466_v59  ;;  %v1966_v35 = vld [vmem:[%s5938_s7 + $0x10] sm:$0xff]  ;;  %v1967_v36 = vld [vmem:[%s5938_s7 + $0x18] sm:$0xff] }
  0x1e   : > { %4391 = vmatprep.subr.bf16.mxu0 %v4843_v3  ;;  %3732 = vmatmul.mubr.f32.vlgmr.msra.gmra.mrb[0].mxu1 %v4992_v40  ;;  %v4440_v44 = vpack.c.bf16 %v1069_v42, %v1062_v41  ;;  %v1988_v30 = vand.u32 4294901760, %v1964_v28  ;;  %v1994_v37 = vand.u32 4294901760, %v1966_v35  ;;  %v1968_v42 = vld [vmem:[%s5938_s7 + $0x20] sm:$0xff] }
  0x1f   : > { %4399 = vmatpush3.bf16.msra.mxu1 %v4940_v14  ;;  %3761 = vmatprep.mubr.msk.f32.mxu1 %vm4844_vm0, %v4845_v13  ;;  %v1538_v4 = vsub.f32 %v1466_v59, %v5189_v61  ;;  %v1975_v59 = vld [vmem:[%s5938_s7 + $0x58] sm:$0xff] }
  0x20   : > { %4400 = vmatprep.subr.bf16.mxu1 %v4843_v3  ;;  %v5270_v33 = vsub.f32 %v1964_v28, %v1988_v30 }
  0x21   : > { %4393 = vmatpush3.bf16.msra.mxu0 %v4392_v52  ;;  %v1463_v52 = vld [vmem:[%s5936_s5 + $0x18] sm:$0xff]  ;;  %v1539_v10 = vand.u32 4294901760, %v1538_v4 }
  0x22   : > { %4394 = vmatprep.subr.bf16.mxu0 %v4843_v3  ;;  %v1478_v58 = vand.u32 4294901760, %v1463_v52 }
  0x23   : > { %4402 = vmatpush3.bf16.msra.mxu1 %v4948_v18  ;;  %v1540_v19 = vsub.f32 %v1538_v4, %v1539_v10 }
  0x24   : > { %4403 = vmatprep.subr.bf16.mxu1 %v4843_v3  ;;  %v4482_v21 = vpack.c.bf16 %v1478_v58, %v1475_v55 }
  0x25   : > { %4396 = vmatpush3.bf16.msra.mxu0 %v4395_v56  ;;  %v5178_v56 = vsub.f32 %v1460_v46, %v1469_v49 }
  0x26   : > { %4406 = vmatprep.subr.bf16.mxu0 %v4843_v3 }
  0x27   : > { %4405 = vmatpush3.bf16.msra.mxu1 %v4981_v31  ;;  %v1550_v0 = vand.u32 4294901760, %v5178_v56 }
  0x28   : > { %3747 = vmatmul.mubr.f32.vlgmr.msra.gmra.mrb[2].mxu0 %v4998_v43  ;;  %4415 = vmatprep.subr.bf16.mxu1 %v4843_v3  ;;  %v4443_v43 = vpack.c.bf16 %v5045_v63, %v5038_v60  ;;  %v4464_v60 = vpack.c.bf16 %v1053_v23, %v1046_v20  ;;  %v5194_v63 = vsub.f32 %v1463_v52, %v1478_v58  ;;  %v1974_v58 = vld [vmem:[%s5938_s7 + $0x50] sm:$0xff] }
  0x29   : > { %4408 = vmatpush3.bf16.msra.mxu0 %v4407_v62  ;;  %3776 = vmatprep.mubr.msk.f32.mxu0 %vm4844_vm0, %v4845_v13  ;;  %v5192_v62 = vsub.f32 %v1462_v51, %v1475_v55  ;;  %v1551_v5 = vsub.f32 %v5178_v56, %v1550_v0  ;;  %v2012_v55 = vand.u32 4294901760, %v1972_v53 }
  0x2a   : > { %4409 = vmatprep.subr.bf16.mxu0 %v4843_v3  ;;  %3762 = vmatmul.mubr.f32.vlgmr.msra.gmra.mrb[2].mxu1 %v507_v47  ;;  %v1461_v47 = vld [vmem:[%s5936_s5 + $0x8] sm:$0xff]  ;;  %v1571_v8 = vand.u32 4294901760, %v5194_v63 }
  0x2b   : > { %4417 = vmatpush3.bf16.msra.mxu1 %v4940_v14  ;;  %3791 = vmatprep.mubr.msk.f32.mxu1 %vm4844_vm0, %v4845_v13  ;;  %v1034_v14 = vand.u32 4294901760, %v1033_v17  ;;  %v1472_v50 = vand.u32 4294901760, %v1461_v47  ;;  %v1564_v7 = vand.u32 4294901760, %v5192_v62  ;;  %v1552_v11 = vand.u32 4294901760, %v1551_v5 }
  0x2c   : > { %4418 = vmatprep.subr.bf16.mxu1 %v4843_v3  ;;  %v1572_v17 = vsub.f32 %v5194_v63, %v1571_v8 }
  0x2d   : > { %4411 = vmatpush3.bf16.msra.mxu0 %v4410_v6  ;;  %v4434_v34 = vpack.c.bf16 %v1041_v27, %v1034_v14  ;;  %v5180_v57 = vsub.f32 %v1461_v47, %v1472_v50  ;;  %v4479_v9 = vpack.c.bf16 %v1472_v50, %v1469_v49  ;;  %v4506_v27 = vpack.c.bf16 %v1571_v8, %v1564_v7  ;;  %v1971_v49 = vld [vmem:[%s5938_s7 + $0x38] sm:$0xff]  ;;  %v1978_v8 = vld [vmem:[%s5938_s7 + $0x70] sm:$0xff] }
  0x2e   : > { %4412 = vmatprep.subr.bf16.mxu0 %v4843_v3  ;;  %v1573_v23 = vand.u32 4294901760, %v1572_v17  ;;  %v2009_v51 = vand.u32 4294901760, %v1971_v49 }
  0x2f   : > { %4420 = vmatpush3.bf16.msra.mxu1 %v4948_v18  ;;  %v1021_v18 = vand.u32 4294901760, %v5098_v25  ;;  %v1557_v1 = vand.u32 4294901760, %v5180_v57  ;;  %v4491_v14 = vpack.c.bf16 %v5180_v57, %v5178_v56 }
  0x30   : > { %4421 = vmatprep.subr.bf16.mxu1 %v4843_v3  ;;  %v5341_v5 = vsub.f32 %v1971_v49, %v2009_v51 }
  0x31   : > { %4414 = vmatpush3.bf16.msra.mxu0 %v4413_v16  ;;  %v1558_v6 = vsub.f32 %v5180_v57, %v1557_v1  ;;  %v1565_v16 = vsub.f32 %v5192_v62, %v1564_v7  ;;  %v4503_v26 = vpack.c.bf16 %v1557_v1, %v1550_v0  ;;  %v1977_v0 = vld [vmem:[%s5938_s7 + $0x68] sm:$0xff] }
  0x32   : > { %4424 = vmatprep.subr.bf16.mxu0 %v4843_v3 }
  0x33   : > { %4423 = vmatpush3.bf16.msra.mxu1 %v4981_v31  ;;  %v1022_v31 = vsub.f32 %v5098_v25, %v1021_v18  ;;  %v1559_v12 = vand.u32 4294901760, %v1558_v6  ;;  %v1566_v20 = vand.u32 4294901760, %v1565_v16  ;;  %v5343_v6 = vsub.f32 %v1972_v53, %v2012_v55 }
  0x34   : > { %3777 = vmatmul.mubr.f32.vlgmr.msra.gmra.mrb[4].mxu0 %v4992_v40  ;;  %4433 = vmatprep.subr.bf16.mxu1 %v4843_v3 }
  0x35   : > { %4426 = vmatpush3.bf16.msra.mxu0 %v5095_v24  ;;  %3806 = vmatprep.mubr.msk.f32.mxu0 %vm4844_vm0, %v4845_v13  ;;  %v4485_v22 = vpack.c.bf16 %v1559_v12, %v1552_v11 }
  0x36   : > { %4427 = vmatprep.subr.bf16.mxu0 %v4843_v3  ;;  %3792 = vmatmul.mubr.f32.vlgmr.msra.gmra.mrb[4].mxu1 %v4992_v40  ;;  %v1023_v40 = vand.u32 4294901760, %v1022_v31  ;;  %v1997_v31 = vand.u32 4294901760, %v1967_v36 }
  0x37   : > { %4435 = vmatpush3.bf16.msra.mxu1 %v4434_v34  ;;  %3821 = vmatprep.mubr.msk.f32.mxu1 %vm4844_vm0, %v4845_v13 }
  0x38   : > { %4436 = vmatprep.subr.bf16.mxu1 %v4843_v3  ;;  %v5286_v41 = vsub.f32 %v1967_v36, %v1997_v31 }
  0x39   : > { %4429 = vmatpush3.bf16.msra.mxu0 %v5112_v32 }
  0x3a   : > { %4430 = vmatprep.subr.bf16.mxu0 %v4843_v3 }
  0x3b   : > { %4438 = vmatpush3.bf16.msra.mxu1 %v4437_v39  ;;  %v5284_v39 = vsub.f32 %v1966_v35, %v1994_v37 }
  0x3c   : > { %4439 = vmatprep.subr.bf16.mxu1 %v4843_v3 }
  0x3d   : > { %4432 = vmatpush3.bf16.msra.mxu0 %v5132_v38  ;;  %v5956_v28 = vand.u32 4294901760, %v5284_v39 }
  0x3e   : > { %4442 = vmatprep.subr.bf16.mxu0 %v4843_v3 }
  0x3f   : > { %4441 = vmatpush3.bf16.msra.mxu1 %v4440_v44 }
  0x40   : > { %3807 = vmatmul.mubr.f32.vlgmr.msra.gmra.mrb[6].mxu0 %v1023_v40  ;;  %4451 = vmatprep.subr.bf16.mxu1 %v4843_v3  ;;  %v1969_v40 = vld [vmem:[%s5938_s7 + $0x28] sm:$0xff] }
  0x41   : > { %4444 = vmatpush3.bf16.msra.mxu0 %v4443_v43  ;;  %3836 = vmatprep.mubr.msk.f32.mxu0 %vm4844_vm0, %v4845_v13  ;;  %v2000_v43 = vand.u32 4294901760, %v1968_v42  ;;  %v2003_v44 = vand.u32 4294901760, %v1969_v40 }
  0x42   : > { %4445 = vmatprep.subr.bf16.mxu0 %v4843_v3  ;;  %3822 = vmatmul.mubr.f32.vlgmr.msra.gmra.mrb[6].mxu1 %v5072_v15 }
  0x43   : > { %4453 = vmatpush3.bf16.msra.mxu1 %v5095_v24  ;;  %3851 = vmatprep.mubr.msk.f32.mxu1 %vm4844_vm0, %v4845_v13  ;;  %v5298_v46 = vsub.f32 %v1968_v42, %v2000_v43  ;;  %v5300_v47 = vsub.f32 %v1969_v40, %v2003_v44 }
  0x44   : > { %4454 = vmatprep.subr.bf16.mxu1 %v4843_v3 }
  0x45   : > { %4447 = vmatpush3.bf16.msra.mxu0 %v4446_v45  ;;  %v5296_v45 = vpack.c.bf16 %v2003_v44, %v2000_v43  ;;  %v5953_v42 = vand.u32 4294901760, %v5300_v47 }
  0x46   : > { %4448 = vmatprep.subr.bf16.mxu0 %v4843_v3 }
  0x47   : > { %4456 = vmatpush3.bf16.msra.mxu1 %v5112_v32  ;;  %v2117_v44 = vsub.f32 %v5300_v47, %v5953_v42 }
  0x48   : > { %4457 = vmatprep.subr.bf16.mxu1 %v4843_v3 }
  0x49   : > { %4450 = vmatpush3.bf16.msra.mxu0 %v4449_v48  ;;  %v1970_v48 = vld [vmem:[%s5938_s7 + $0x30] sm:$0xff]  ;;  %v2118_v49 = vand.u32 4294901760, %v2117_v44 }
  0x4a   : > { %4460 = vmatprep.subr.bf16.mxu0 %v4843_v3  ;;  %v2006_v50 = vand.u32 4294901760, %v1970_v48 }
  0x4b   : > { %4459 = vmatpush3.bf16.msra.mxu1 %v5132_v38 }
  0x4c   : > { %3837 = vmatmul.mubr.f32.vlgmr.msra.gmra.mrb[8].mxu0 %v5098_v25  ;;  %4469 = vmatprep.subr.bf16.mxu1 %v4843_v3  ;;  %v4488_v25 = vpack.c.bf16 %v1573_v23, %v1566_v20  ;;  %v5310_v52 = vpack.c.bf16 %v2009_v51, %v2006_v50  ;;  %v5951_v51 = vand.u32 4294901760, %v5341_v5 }
  0x4d   : > { %4462 = vmatpush3.bf16.msra.mxu0 %v4461_v54  ;;  %3866 = vmatprep.mubr.msk.f32.mxu0 %vm4844_vm0, %v4845_v13  ;;  %v1973_v54 = vld [vmem:[%s5938_s7 + $0x48] sm:$0xff] }
  0x4e   : > { %4463 = vmatprep.subr.bf16.mxu0 %v4843_v3  ;;  %3852 = vmatmul.mubr.f32.vlgmr.msra.gmra.mrb[8].mxu1 %v1021_v18  ;;  %v2015_v56 = vand.u32 4294901760, %v1973_v54 }
  0x4f   : > { %4471 = vmatpush3.bf16.msra.mxu1 %v5095_v24  ;;  %3881 = vmatprep.mubr.msk.f32.mxu1 %vm4844_vm0, %v4845_v13  ;;  %v1541_v24 = vand.u32 4294901760, %v1540_v19  ;;  %v2030_v19 = vand.u32 4294901760, %v1978_v8 }
  0x50   : > { %4472 = vmatprep.subr.bf16.mxu1 %v4843_v3  ;;  %v5320_v57 = vpack.c.bf16 %v2015_v56, %v2012_v55  ;;  %v5345_v7 = vsub.f32 %v1973_v54, %v2015_v56  ;;  %v2131_v55 = vsub.f32 %v5341_v5, %v5951_v51 }
  0x51   : > { %4465 = vmatpush3.bf16.msra.mxu0 %v4464_v60  ;;  %v2018_v60 = vand.u32 4294901760, %v1974_v58 }
  0x52   : > { %4466 = vmatprep.subr.bf16.mxu0 %v4843_v3 }
  0x53   : > { %4474 = vmatpush3.bf16.msra.mxu1 %v5112_v32  ;;  %v1991_v32 = vand.u32 4294901760, %v1965_v29 }
  0x54   : > { %4475 = vmatprep.subr.bf16.mxu1 %v4843_v3 }
  0x55   : > { %4468 = vmatpush3.bf16.msra.mxu0 %v4467_v2  ;;  %v5268_v18 = vpack.c.bf16 %v1991_v32, %v1988_v30  ;;  %v5272_v34 = vsub.f32 %v1965_v29, %v1991_v32  ;;  %v2027_v2 = vand.u32 4294901760, %v1977_v0  ;;  %v5955_v29 = vand.u32 4294901760, %v5286_v41 }
  0x56   : > { %4478 = vmatprep.subr.bf16.mxu0 %v4843_v3  ;;  %v2096_v32 = vsub.f32 %v5284_v39, %v5956_v28 }
  0x57   : > { %4477 = vmatpush3.bf16.msra.mxu1 %v5132_v38  ;;  %v5282_v38 = vpack.c.bf16 %v1997_v31, %v1994_v37  ;;  %v5362_v17 = vsub.f32 %v1977_v0, %v2027_v2  ;;  %v5957_v20 = vand.u32 4294901760, %v5272_v34  ;;  %v2103_v35 = vsub.f32 %v5286_v41, %v5955_v29 }
  0x58   : > { %3867 = vmatmul.mubr.f32.vlgmr.msra.gmra.mrb[10].mxu0 %v5072_v15  ;;  %4484 = vmatprep.subr.bf16.mxu1 %v4843_v3  ;;  %v2097_v36 = vand.u32 4294901760, %v2096_v32  ;;  %v5954_v31 = vand.u32 4294901760, %v5298_v46 }
  0x59   : > { %4480 = vmatpush3.bf16.msra.mxu0 %v4479_v9  ;;  %3892 = vmatprep.mubr.msk.f32.mxu0 %vm4844_vm0, %v4845_v13  ;;  %v2104_v37 = vand.u32 4294901760, %v2103_v35  ;;  %v5945_v35 = vand.u32 4294901760, %v5362_v17 }
  0x5a   : > { %4481 = vmatprep.subr.bf16.mxu0 %v4843_v3  ;;  %3882 = vmatmul.mubr.f32.vlgmr.msra.gmra.mrb[10].mxu1 %v5072_v15  ;;  %v4494_v15 = vpack.c.bf16 %v5194_v63, %v5192_v62  ;;  %v1976_v63 = vld [vmem:[%s5938_s7 + $0x60] sm:$0xff]  ;;  %v2110_v43 = vsub.f32 %v5298_v46, %v5954_v31 }
  0x5b   : > { %4486 = vmatpush3.bf16.msra.mxu1 %v4485_v22  ;;  %3903 = vmatprep.mubr.msk.f32.mxu1 %vm4844_vm0, %v4845_v13  ;;  %v2024_v1 = vand.u32 4294901760, %v1976_v63  ;;  %v5958_v22 = vand.u32 4294901760, %v5270_v33  ;;  %v5394_v40 = vpack.c.bf16 %v2104_v37, %v2097_v36  ;;  %v2173_v44 = vsub.f32 %v5362_v17, %v5945_v35 }
  0x5c   : > { %4487 = vmatprep.subr.bf16.mxu1 %v4843_v3 }
  0x5d   : > { %4483 = vmatpush3.bf16.msra.mxu0 %v4482_v21  ;;  %v5358_v12 = vpack.c.bf16 %v2027_v2, %v2024_v1  ;;  %v5360_v16 = vsub.f32 %v1976_v63, %v2024_v1 }
  0x5e   : > { %4490 = vmatprep.subr.bf16.mxu0 %v4843_v3 }
  0x5f   : > { %4489 = vmatpush3.bf16.msra.mxu1 %v4488_v25  ;;  %v2082_v25 = vsub.f32 %v5270_v33, %v5958_v22  ;;  %v5946_v32 = vand.u32 4294901760, %v5360_v16 }
  0x60   : > { %3893 = vmatmul.mubr.f32.vlgmr.msra.gmra.mrb[12].mxu0 %v1541_v24  ;;  %4496 = vmatprep.subr.bf16.mxu1 %v4843_v3  ;;  %v5370_v24 = vsub.f32 %v1978_v8, %v2030_v19 }
  0x61   : > { %4492 = vmatpush3.bf16.msra.mxu0 %v4491_v14  ;;  %3914 = vmatprep.mubr.msk.f32.mxu0 %vm4844_vm0, %v4845_v13 }
  0x62   : > { %4493 = vmatprep.subr.bf16.mxu0 %v4843_v3  ;;  %3904 = vmatmul.mubr.f32.vlgmr.msra.gmra.mrb[12].mxu1 %v5189_v61 }
  0x63   : > { %4498 = vmatpush3.bf16.msra.mxu1 %v4479_v9  ;;  %3925 = vmatprep.mubr.msk.f32.mxu1 %vm4844_vm0, %v4845_v13 }
  0x64   : > { %4499 = vmatprep.subr.bf16.mxu1 %v4843_v3 }
  0x65   : > { %4495 = vmatpush3.bf16.msra.mxu0 %v4494_v15  ;;  %v2089_v15 = vsub.f32 %v5272_v34, %v5957_v20 }
  0x66   : > { %4502 = vmatprep.subr.bf16.mxu0 %v4843_v3 }
  0x67   : > { %4501 = vmatpush3.bf16.msra.mxu1 %v4482_v21 }
  0x68   : > { %3915 = vmatmul.mubr.f32.vlgmr.msra.gmra.mrb[14].mxu0 %v1538_v4  ;;  %4508 = vmatprep.subr.bf16.mxu1 %v4843_v3  ;;  %v5339_v4 = vsub.f32 %v1970_v48, %v2006_v50  ;;  %v2111_v48 = vand.u32 4294901760, %v2110_v43  ;;  %v2166_v43 = vsub.f32 %v5360_v16, %v5946_v32 }
  0x69   : > { %4504 = vmatpush3.bf16.msra.mxu0 %v4503_v26  ;;  %3936 = vmatprep.mubr.msk.f32.mxu0 %vm4844_vm0, %v4845_v13  ;;  %v2083_v26 = vand.u32 4294901760, %v2082_v25 }
  0x6a   : > { %4505 = vmatprep.subr.bf16.mxu0 %v4843_v3  ;;  %3926 = vmatmul.mubr.f32.vlgmr.msra.gmra.mrb[14].mxu1 %v1539_v10  ;;  %v5354_v10 = vsub.f32 %v1974_v58, %v2018_v60  ;;  %v5952_v50 = vand.u32 4294901760, %v5339_v4  ;;  %v5404_v53 = vpack.c.bf16 %v2118_v49, %v2111_v48  ;;  %v2132_v58 = vand.u32 4294901760, %v2131_v55 }
  0x6b   : > { %4510 = vmatpush3.bf16.msra.mxu1 %v4479_v9  ;;  %3947 = vmatprep.mubr.msk.f32.mxu1 %vm4844_vm0, %v4845_v13  ;;  %v1979_v9 = vld [vmem:[%s5938_s7 + $0x78] sm:$0xff]  ;;  %v2167_v49 = vand.u32 4294901760, %v2166_v43  ;;  %v5944_v55 = vand.u32 4294901760, %v5370_v24 }
  0x6c   : > { %4511 = vmatprep.subr.bf16.mxu1 %v4843_v3  ;;  %v2124_v54 = vsub.f32 %v5339_v4, %v5952_v50  ;;  %v5948_v8 = vand.u32 4294901760, %v5354_v10 }
  0x6d   : > { %4507 = vmatpush3.bf16.msra.mxu0 %v4506_v27  ;;  %v2090_v27 = vand.u32 4294901760, %v2089_v15 }
  0x6e   : > { %4514 = vmatprep.subr.bf16.mxu0 %v4843_v3  ;;  %v2125_v56 = vand.u32 4294901760, %v2124_v54  ;;  %v2174_v54 = vand.u32 4294901760, %v2173_v44  ;;  %v4566_v44 = vpack.c.bf16 %v5286_v41, %v5284_v39 }
  0x6f   : > { %4513 = vmatpush3.bf16.msra.mxu1 %v4482_v21  ;;  %v2033_v21 = vand.u32 4294901760, %v1979_v9  ;;  %v5384_v30 = vpack.c.bf16 %v2090_v27, %v2083_v26 }
  0x70   : > { %3937 = vmatmul.mubr.f32.vlgmr.msra.gmra.mrb[16].mxu0 %v5189_v61  ;;  %4658 = vmatprep.subr.bf16.mxu1 %v4843_v3 }
  0x71   : > { %3982 = vmatprep.mubr.msk.f32.mxu0 %vm4844_vm0, %v4845_v13  ;;  %4516 = vmatpush3.bf16.msra.mxu0 %v5268_v18  ;;  %v5368_v23 = vpack.c.bf16 %v2033_v21, %v2030_v19  ;;  %v5372_v14 = vsub.f32 %v1979_v9, %v2033_v21  ;;  %v2152_v21 = vsub.f32 %v5354_v10, %v5948_v8 }
  0x72   : > { %3948 = vmatmul.mubr.f32.vlgmr.msra.gmra.mrb[16].mxu1 %v5189_v61  ;;  %4517 = vmatprep.subr.bf16.mxu0 %v4843_v3  ;;  %v2021_v61 = vand.u32 4294901760, %v1975_v59 }
  0x73   : > { %4192 = vmatprep.mubr.msk.f32.mxu1 %vm4844_vm0, %v4845_v13  ;;  %v2153_v26 = vand.u32 4294901760, %v2152_v21  ;;  %v4584_v32 = vpack.c.bf16 %v5372_v14, %v5370_v24 }
  0x74   : > { %v5330_v62 = vpack.c.bf16 %v2021_v61, %v2018_v60  ;;  %v5356_v11 = vsub.f32 %v1975_v59, %v2021_v61  ;;  %v5950_v59 = vand.u32 4294901760, %v5343_v6  ;;  %v5949_v60 = vand.u32 4294901760, %v5345_v7 }
  0x75   : > { %4519 = vmatpush3.bf16.msra.mxu0 %v5282_v38  ;;  %v5414_v61 = vpack.c.bf16 %v2132_v58, %v2125_v56  ;;  %v5943_v56 = vand.u32 4294901760, %v5372_v14 }
  0x76   : > { %4520 = vmatprep.subr.bf16.mxu0 %v4843_v3  ;;  %v2138_v63 = vsub.f32 %v5343_v6, %v5950_v59  ;;  %v2145_v0 = vsub.f32 %v5345_v7, %v5949_v60  ;;  %v5947_v9 = vand.u32 4294901760, %v5356_v11 }
  0x78   : > { %v2139_v1 = vand.u32 4294901760, %v2138_v63  ;;  %v2146_v2 = vand.u32 4294901760, %v2145_v0  ;;  %v2159_v25 = vsub.f32 %v5356_v11, %v5947_v9  ;;  %v5444_v0 = vpack.c.bf16 %v2174_v54, %v2167_v49 }
  0x79   : > { %4522 = vmatpush3.bf16.msra.mxu0 %v5296_v45 }
  0x7a   : > { %4523 = vmatprep.subr.bf16.mxu0 %v4843_v3  ;;  %v5424_v19 = vpack.c.bf16 %v2146_v2, %v2139_v1  ;;  %v2160_v27 = vand.u32 4294901760, %v2159_v25  ;;  %v2180_v1 = vsub.f32 %v5370_v24, %v5944_v55  ;;  %v2187_v2 = vsub.f32 %v5372_v14, %v5943_v56 }
  0x7b   : > { %v4578_v55 = vpack.c.bf16 %v5356_v11, %v5354_v10 }
  0x7c   : > { %v5434_v37 = vpack.c.bf16 %v2160_v27, %v2153_v26  ;;  %v2181_v21 = vand.u32 4294901760, %v2180_v1  ;;  %v2188_v25 = vand.u32 4294901760, %v2187_v2  ;;  %v4572_v1 = vpack.c.bf16 %v5341_v5, %v5339_v4 }
  0x7d   : > { %4525 = vmatpush3.bf16.msra.mxu0 %v5310_v52 }
  0x7e   : > { %4526 = vmatprep.subr.bf16.mxu0 %v4843_v3  ;;  %v5452_v26 = vpack.c.bf16 %v2188_v25, %v2181_v21 }
  0x81   : > { %4528 = vmatpush3.bf16.msra.mxu0 %v5320_v57 }
  0x82   : > { %4529 = vmatprep.subr.bf16.mxu0 %v4843_v3 }
  0x85   : > { %4531 = vmatpush3.bf16.msra.mxu0 %v5330_v62 }
  0x86   : > { %4532 = vmatprep.subr.bf16.mxu0 %v4843_v3 }
  0x89   : > { %4534 = vmatpush3.bf16.msra.mxu0 %v5358_v12 }
  0x8a   : > { %4535 = vmatprep.subr.bf16.mxu0 %v4843_v3 }
  0x8d   : > { %4537 = vmatpush3.bf16.msra.mxu0 %v5368_v23 }
  0x8e   : > { %4538 = vmatprep.subr.bf16.mxu0 %v4843_v3 }
  0xef   : > { %v511_v15 = vpop.f32.mrb[0].mxu0 }
  0xf0   : > { %v3718_v36 = vpop.f32.mrb[1].mxu0 }
  0xf1   : > { %v612_v48 = vpop.f32.mrb[0].mxu1 }
  0xf2   : > { %v613_v58 = vadd.f32 %v612_v48, %v511_v15  ;;  %v3733_v63 = vpop.f32.mrb[1].mxu1  ;;  %v4563_v15 = vpack.c.bf16 %v5272_v34, %v5270_v33 }
  0xf3   : > { %v4569_v63 = vpack.c.bf16 %v5300_v47, %v5298_v46 }
  0xfb   : > { %v696_v27 = vpop.f32.mrb[2].mxu0 }
  0xfc   : > { %v697_v36 = vadd.f32 %v696_v27, %v613_v58  ;;  %v3748_v43 = vpop.f32.mrb[3].mxu0  ;;  %v4575_v58 = vpack.c.bf16 %v5345_v7, %v5343_v6 }
  0xfd   : > { %v775_v48 = vpop.f32.mrb[2].mxu1 }
  0xfe   : > { %v776_v49 = vadd.f32 %v775_v48, %v697_v36  ;;  %v3763_v54 = vpop.f32.mrb[3].mxu1  ;;  %v4581_v36 = vpack.c.bf16 %v5362_v17, %v5360_v16 }
 0x107   : > { %v864_v2 = vpop.f32.mrb[4].mxu0 }
 0x108   : > { %v865_v21 = vadd.f32 %v864_v2, %v776_v49  ;;  %v3778_v25 = vpop.f32.mrb[5].mxu0 }
 0x109   : > { %v941_v27 = vpop.f32.mrb[4].mxu1 }
 0x10a   : > { %v942_v43 = vadd.f32 %v941_v27, %v865_v21  ;;  %v3793_v56 = vpop.f32.mrb[5].mxu1 }
 0x113   : > { %v1025_v48 = vpop.f32.mrb[6].mxu0 }
 0x114   : > { %v1026_v54 = vadd.f32 %v1025_v48, %v942_v43  ;;  %v3808_v35 = vpop.f32.mrb[7].mxu0 }
 0x115   : > { %v1126_v49 = vpop.f32.mrb[6].mxu1 }
 0x116   : > { %v1127_v2 = vadd.f32 %v1126_v49, %v1026_v54  ;;  %v3823_v25 = vpop.f32.mrb[7].mxu1 }
 0x11f   : > { %v1210_v9 = vpop.f32.mrb[8].mxu0 }
 0x120   : > { %v1211_v8 = vadd.f32 %v1210_v9, %v1127_v2  ;;  %v3838_v60 = vpop.f32.mrb[9].mxu0 }
 0x121   : > { %v1289_v21 = vpop.f32.mrb[8].mxu1 }
 0x122   : > { %v1290_v56 = vadd.f32 %v1289_v21, %v1211_v8  ;;  %v3853_v27 = vpop.f32.mrb[9].mxu1 }
 0x12b   : > { %v1378_v59 = vpop.f32.mrb[10].mxu0 }
 0x12c   : > { %v1379_v51 = vadd.f32 %v1378_v59, %v1290_v56  ;;  %v3868_v50 = vpop.f32.mrb[11].mxu0 }
 0x12d   : > { %v1455_v42 = vpop.f32.mrb[10].mxu1 }
 0x12e   : > { %v1456_v31 = vadd.f32 %v1455_v42, %v1379_v51  ;;  %v3883_v29 = vpop.f32.mrb[11].mxu1 }
 0x12f   : > { %v3381_v29 = vld [vmem:[%s5937_s6] ss:$0 sm:$0xff] }
 0x133   : > { %v1543_v43 = vpop.f32.mrb[12].mxu0 }
 0x134   : > { %v3894_v35 = vpop.f32.mrb[13].mxu0 }
 0x135   : > { %v1634_v48 = vpop.f32.mrb[12].mxu1 }
 0x136   : > { %v1635_v28 = vadd.f32 %v1634_v48, %v1543_v43  ;;  %v3905_v20 = vpop.f32.mrb[13].mxu1 }
 0x13b   : > { %v1714_v22 = vpop.f32.mrb[14].mxu0 }
 0x13c   : > { %v1715_v54 = vadd.f32 %v1714_v22, %v1635_v28  ;;  %v3916_v49 = vpop.f32.mrb[15].mxu0 }
 0x13d   : > { %v1791_v25 = vpop.f32.mrb[14].mxu1 }
 0x13e   : > { %v1792_v9 = vadd.f32 %v1791_v25, %v1715_v54  ;;  %v3927_v60 = vpop.f32.mrb[15].mxu1  ;;  %v2636_v25 = vld [vmem:[%s5940_s9 + $0x30] sm:$0xff] }
 0x143   : > { %v1874_v2 = vpop.f32.mrb[16].mxu0 }
 0x144   : > { %v1875_v8 = vadd.f32 %v1874_v2, %v1792_v9  ;;  %v3938_v21 = vpop.f32.mrb[17].mxu0  ;;  %v2637_v9 = vld [vmem:[%s5940_s9 + $0x38] sm:$0xff] }
 0x145   : > { %v1949_v27 = vpop.f32.mrb[16].mxu1 }
 0x146   : > { %v1950_v59 = vadd.f32 %v1949_v27, %v1875_v8  ;;  %v3949_v50 = vpop.f32.mrb[17].mxu1 }
 0x148   : > { %v1953_v42 = vadd.f32 %v1950_v59, %v1456_v31  ;;  %v2631_v31 = vld [vmem:[%s5940_s9 + $0x8] sm:$0xff] }
 0x14a   : > { %v1961_v51 = vadd.f32 %v3381_v29, %v1953_v42  ;;  %v2672_v42 = vand.u32 4294901760, %v2636_v25 }
 0x14c   : > { %v1962_v56 = vmul.f32 0.1, %v1961_v51 }
 0x14e   : > { %v1963_v20 = vmax.f32 %v1961_v51, %v1962_v56  ;;  %v2675_v51 = vand.u32 4294901760, %v2637_v9  ;;  %v5553_v56 = vsub.f32 %v2636_v25, %v2672_v42 }
 0x150   : > { %v5473_v43 = vand.u32 4294901760, %v1963_v20 }
 0x152   : > { %v5476_v22 = vsub.f32 %v1963_v20, %v5473_v43  ;;  %v5555_v20 = vsub.f32 %v2637_v9, %v2675_v51 }
 0x154   : > { %v2070_v28 = vand.u32 4294901760, %v5476_v22 }
 0x156   : > { %v2071_v35 = vsub.f32 %v5476_v22, %v2070_v28 }
 0x158   : > { %v2072_v48 = vand.u32 4294901760, %v2071_v35  ;;  %v5569_v35 = vpack.c.bf16 %v2675_v51, %v2672_v42 }
 0x15a   : > { %3983 = vmatmul.mubr.f32.vlgmr.msra.gmra.mrb[18].mxu0 %v2072_v48 }
 0x15b   : > { %4540 = vmatpush3.bf16.msra.mxu0 %v5384_v30  ;;  %4017 = vmatprep.mubr.msk.f32.mxu0 %vm4844_vm0, %v4845_v13  ;;  %v2630_v30 = vld [vmem:[%s5940_s9] sm:$0xff] }
 0x15c   : > { %4541 = vmatprep.subr.bf16.mxu0 %v4843_v3 }
 0x15f   : > { %4543 = vmatpush3.bf16.msra.mxu0 %v5394_v40  ;;  %v2632_v40 = vld [vmem:[%s5940_s9 + $0x10] sm:$0xff] }
 0x160   : > { %4544 = vmatprep.subr.bf16.mxu0 %v4843_v3 }
 0x163   : > { %4546 = vmatpush3.bf16.msra.mxu0 %v5404_v53  ;;  %v2654_v53 = vand.u32 4294901760, %v2630_v30 }
 0x164   : > { %4547 = vmatprep.subr.bf16.mxu0 %v4843_v3 }
 0x165   : > { %v5533_v2 = vsub.f32 %v2630_v30, %v2654_v53  ;;  %v5973_v30 = vand.u32 4294901760, %v5345_v7  ;;  %v5979_v7 = vand.u32 4294901760, %v5372_v14 }
 0x167   : > { %4549 = vmatpush3.bf16.msra.mxu0 %v5414_v61  ;;  %v2657_v61 = vand.u32 4294901760, %v2631_v31  ;;  %v2747_v51 = vand.u32 4294901760, %v5533_v2 }
 0x168   : > { %4550 = vmatprep.subr.bf16.mxu0 %v4843_v3 }
 0x169   : > { %v5531_v60 = vpack.c.bf16 %v2657_v61, %v2654_v53  ;;  %v5535_v8 = vsub.f32 %v2631_v31, %v2657_v61 }
 0x16b   : > { %4552 = vmatpush3.bf16.msra.mxu0 %v5424_v19  ;;  %v2633_v19 = vld [vmem:[%s5940_s9 + $0x18] sm:$0xff]  ;;  %4660 = vmatpush3.bf16.msra.mxu1 %v5531_v60 }
 0x16c   : > { %4553 = vmatprep.subr.bf16.mxu0 %v4843_v3  ;;  %4661 = vmatprep.subr.bf16.mxu1 %v4843_v3 }
 0x16f   : > { %4555 = vmatpush3.bf16.msra.mxu0 %v5434_v37  ;;  %v2660_v37 = vand.u32 4294901760, %v2632_v40 }
 0x170   : > { %4556 = vmatprep.subr.bf16.mxu0 %v4843_v3 }
 0x171   : > { %v5537_v21 = vsub.f32 %v2632_v40, %v2660_v37 }
 0x173   : > { %4558 = vmatpush3.bf16.msra.mxu0 %v5444_v0  ;;  %v2634_v0 = vld [vmem:[%s5940_s9 + $0x20] sm:$0xff] }
 0x174   : > { %4559 = vmatprep.subr.bf16.mxu0 %v4843_v3  ;;  %v2666_v54 = vand.u32 4294901760, %v2634_v0 }
 0x176   : > { %v5541_v59 = vsub.f32 %v2634_v0, %v2666_v54 }
 0x177   : > { %4561 = vmatpush3.bf16.msra.mxu0 %v5452_v26  ;;  %v2635_v26 = vld [vmem:[%s5940_s9 + $0x28] sm:$0xff] }
 0x178   : > { %4562 = vmatprep.subr.bf16.mxu0 %v4843_v3  ;;  %v2669_v49 = vand.u32 4294901760, %v2635_v26 }
 0x17a   : > { %4018 = vmatmul.mubr.f32.vlgmr.msra.gmra.mrb[18].mxu0 %v5473_v43  ;;  %v5549_v29 = vsub.f32 %v2635_v26, %v2669_v49 }
 0x17b   : > { %4564 = vmatpush3.bf16.msra.mxu0 %v4563_v15  ;;  %4052 = vmatprep.mubr.msk.f32.mxu0 %vm4844_vm0, %v4845_v13  ;;  %v2663_v15 = vand.u32 4294901760, %v2633_v19 }
 0x17c   : > { %4565 = vmatprep.subr.bf16.mxu0 %v4843_v3 }
 0x17d   : > { %v5539_v27 = vsub.f32 %v2633_v19, %v2663_v15  ;;  %v5547_v50 = vpack.c.bf16 %v2663_v15, %v2660_v37  ;;  %v2644_v19 = vld [vmem:[%s5940_s9 + $0x70] sm:$0xff]  ;;  %v2645_v37 = vld [vmem:[%s5940_s9 + $0x78] sm:$0xff] }
 0x17e   : > { %v2696_v9 = vand.u32 4294901760, %v2644_v19  ;;  %v2699_v42 = vand.u32 4294901760, %v2645_v37 }
 0x17f   : > { %4567 = vmatpush3.bf16.msra.mxu0 %v4566_v44  ;;  %4663 = vmatpush3.bf16.msra.mxu1 %v5547_v50  ;;  %v5561_v44 = vpack.c.bf16 %v2669_v49, %v2666_v54 }
 0x180   : > { %4568 = vmatprep.subr.bf16.mxu0 %v4843_v3  ;;  %4664 = vmatprep.subr.bf16.mxu1 %v4843_v3 }
 0x183   : > { %4570 = vmatpush3.bf16.msra.mxu0 %v4569_v63  ;;  %4666 = vmatpush3.bf16.msra.mxu1 %v5561_v44 }
 0x184   : > { %4571 = vmatprep.subr.bf16.mxu0 %v4843_v3  ;;  %4667 = vmatprep.subr.bf16.mxu1 %v4843_v3 }
 0x187   : > { %4573 = vmatpush3.bf16.msra.mxu0 %v4572_v1  ;;  %4669 = vmatpush3.bf16.msra.mxu1 %v5569_v35  ;;  %v5966_v1 = vand.u32 4294901760, %v5284_v39  ;;  %v5971_v39 = vand.u32 4294901760, %v5341_v5  ;;  %v5977_v5 = vand.u32 4294901760, %v5362_v17  ;;  %v2642_v17 = vld [vmem:[%s5940_s9 + $0x60] sm:$0xff] }
 0x188   : > { %4574 = vmatprep.subr.bf16.mxu0 %v4843_v3  ;;  %4670 = vmatprep.subr.bf16.mxu1 %v4843_v3 }
 0x18b   : > { %4576 = vmatpush3.bf16.msra.mxu0 %v4575_v58  ;;  %v5967_v58 = vand.u32 4294901760, %v5286_v41 }
 0x18c   : > { %4577 = vmatprep.subr.bf16.mxu0 %v4843_v3 }
 0x18f   : > { %4579 = vmatpush3.bf16.msra.mxu0 %v4578_v55  ;;  %v5965_v55 = vand.u32 4294901760, %v5272_v34  ;;  %v5969_v34 = vand.u32 4294901760, %v5300_v47  ;;  %v5975_v47 = vand.u32 4294901760, %v5356_v11 }
 0x190   : > { %4580 = vmatprep.subr.bf16.mxu0 %v4843_v3 }
 0x193   : > { %4582 = vmatpush3.bf16.msra.mxu0 %v4581_v36  ;;  %v4614_v36 = vpack.c.bf16 %v5967_v58, %v5966_v1  ;;  %v5727_v1 = vsub.f32 %v2645_v37, %v2699_v42  ;;  %v2748_v58 = vsub.f32 %v5533_v2, %v2747_v51 }
 0x194   : > { %4583 = vmatprep.subr.bf16.mxu0 %v4843_v3 }
 0x197   : > { %4585 = vmatpush3.bf16.msra.mxu0 %v4584_v32  ;;  %v5964_v32 = vand.u32 4294901760, %v5270_v33  ;;  %v5968_v33 = vand.u32 4294901760, %v5298_v46  ;;  %v5974_v46 = vand.u32 4294901760, %v5354_v10  ;;  %v2641_v10 = vld [vmem:[%s5940_s9 + $0x58] sm:$0xff] }
 0x198   : > { %4586 = vmatprep.subr.bf16.mxu0 %v4843_v3 }
 0x199   : > { %v4611_v63 = vpack.c.bf16 %v5965_v55, %v5964_v32  ;;  %v4617_v48 = vpack.c.bf16 %v5969_v34, %v5968_v33  ;;  %v4626_v40 = vpack.c.bf16 %v5975_v47, %v5974_v46  ;;  %v2754_v32 = vand.u32 4294901760, %v5535_v8 }
 0x19a   : > { %4053 = vmatmul.mubr.f32.vlgmr.msra.gmra.mrb[18].mxu0 %v5476_v22  ;;  %v5970_v22 = vand.u32 4294901760, %v5339_v4  ;;  %v5976_v4 = vand.u32 4294901760, %v5360_v16  ;;  %v5723_v55 = vpack.c.bf16 %v2699_v42, %v2696_v9  ;;  %v2761_v33 = vand.u32 4294901760, %v5537_v21 }
 0x19b   : > { %4588 = vmatpush3.bf16.msra.mxu0 %v5268_v18  ;;  %4087 = vmatprep.mubr.msk.f32.mxu0 %vm4844_vm0, %v4845_v13  ;;  %v2768_v34 = vand.u32 4294901760, %v5539_v27  ;;  %v2775_v46 = vand.u32 4294901760, %v5541_v59  ;;  %v2782_v47 = vand.u32 4294901760, %v5549_v29 }
 0x19c   : > { %4589 = vmatprep.subr.bf16.mxu0 %v4843_v3  ;;  %v4620_v41 = vpack.c.bf16 %v5971_v39, %v5970_v22  ;;  %v4629_v53 = vpack.c.bf16 %v5977_v5, %v5976_v4  ;;  %v2762_v39 = vsub.f32 %v5537_v21, %v2761_v33 }
 0x19d   : > { %v2776_v4 = vsub.f32 %v5541_v59, %v2775_v46  ;;  %v2783_v5 = vsub.f32 %v5549_v29, %v2782_v47 }
 0x19f   : > { %4591 = vmatpush3.bf16.msra.mxu0 %v5282_v38 }
 0x1a0   : > { %4592 = vmatprep.subr.bf16.mxu0 %v4843_v3 }
 0x1a3   : > { %4594 = vmatpush3.bf16.msra.mxu0 %v5296_v45 }
 0x1a4   : > { %4595 = vmatprep.subr.bf16.mxu0 %v4843_v3 }
 0x1a7   : > { %4597 = vmatpush3.bf16.msra.mxu0 %v5310_v52 }
 0x1a8   : > { %4598 = vmatprep.subr.bf16.mxu0 %v4843_v3 }
 0x1ab   : > { %4600 = vmatpush3.bf16.msra.mxu0 %v5320_v57 }
 0x1ac   : > { %4601 = vmatprep.subr.bf16.mxu0 %v4843_v3 }
 0x1af   : > { %4603 = vmatpush3.bf16.msra.mxu0 %v5330_v62 }
 0x1b0   : > { %4604 = vmatprep.subr.bf16.mxu0 %v4843_v3 }
 0x1b3   : > { %4606 = vmatpush3.bf16.msra.mxu0 %v5358_v12 }
 0x1b4   : > { %4607 = vmatprep.subr.bf16.mxu0 %v4843_v3 }
 0x1b7   : > { %4609 = vmatpush3.bf16.msra.mxu0 %v5368_v23 }
 0x1b8   : > { %4610 = vmatprep.subr.bf16.mxu0 %v4843_v3 }
 0x1ba   : > { %4088 = vmatmul.mubr.f32.vlgmr.msra.gmra.mrb[18].mxu0 %v2070_v28  ;;  %v5972_v28 = vand.u32 4294901760, %v5343_v6  ;;  %v5978_v6 = vand.u32 4294901760, %v5370_v24  ;;  %v2690_v24 = vand.u32 4294901760, %v2642_v17 }
 0x1bb   : > { %4612 = vmatpush3.bf16.msra.mxu0 %v4611_v63  ;;  %4122 = vmatprep.mubr.msk.f32.mxu0 %vm4844_vm0, %v4845_v13  ;;  %v5725_v63 = vsub.f32 %v2644_v19, %v2696_v9 }
 0x1bc   : > { %4613 = vmatprep.subr.bf16.mxu0 %v4843_v3  ;;  %v4623_v31 = vpack.c.bf16 %v5973_v30, %v5972_v28  ;;  %v4632_v61 = vpack.c.bf16 %v5979_v7, %v5978_v6  ;;  %v5716_v49 = vsub.f32 %v2642_v17, %v2690_v24  ;;  %v2763_v30 = vand.u32 4294901760, %v2762_v39 }
 0x1bd   : > { %v2789_v6 = vand.u32 4294901760, %v5553_v56  ;;  %v2796_v7 = vand.u32 4294901760, %v5555_v20 }
 0x1bf   : > { %4615 = vmatpush3.bf16.msra.mxu0 %v4614_v36  ;;  %v2755_v36 = vsub.f32 %v5535_v8, %v2754_v32 }
 0x1c0   : > { %4616 = vmatprep.subr.bf16.mxu0 %v4843_v3 }
 0x1c1   : > { %v2756_v22 = vand.u32 4294901760, %v2755_v36 }
 0x1c3   : > { %4618 = vmatpush3.bf16.msra.mxu0 %v4617_v48  ;;  %v2749_v48 = vand.u32 4294901760, %v2748_v58 }
 0x1c4   : > { %4619 = vmatprep.subr.bf16.mxu0 %v4843_v3 }
 0x1c5   : > { %v5745_v28 = vpack.c.bf16 %v2756_v22, %v2749_v48  ;;  %v5962_v22 = vand.u32 4294901760, %v5716_v49 }
 0x1c7   : > { %4621 = vmatpush3.bf16.msra.mxu0 %v4620_v41  ;;  %v2769_v41 = vsub.f32 %v5539_v27, %v2768_v34 }
 0x1c8   : > { %4622 = vmatprep.subr.bf16.mxu0 %v4843_v3 }
 0x1cb   : > { %4624 = vmatpush3.bf16.msra.mxu0 %v4623_v31  ;;  %v2770_v31 = vand.u32 4294901760, %v2769_v41 }
 0x1cc   : > { %4625 = vmatprep.subr.bf16.mxu0 %v4843_v3 }
 0x1cf   : > { %4627 = vmatpush3.bf16.msra.mxu0 %v4626_v40  ;;  %v5749_v40 = vpack.c.bf16 %v2770_v31, %v2763_v30  ;;  %v2832_v30 = vsub.f32 %v5716_v49, %v5962_v22 }
 0x1d0   : > { %4628 = vmatprep.subr.bf16.mxu0 %v4843_v3 }
 0x1d3   : > { %4630 = vmatpush3.bf16.msra.mxu0 %v4629_v53  ;;  %v2777_v53 = vand.u32 4294901760, %v2776_v4  ;;  %v2833_v4 = vand.u32 4294901760, %v2832_v30 }
 0x1d4   : > { %4631 = vmatprep.subr.bf16.mxu0 %v4843_v3 }
 0x1d7   : > { %4633 = vmatpush3.bf16.msra.mxu0 %v4632_v61  ;;  %v2784_v61 = vand.u32 4294901760, %v2783_v5 }
 0x1d8   : > { %4634 = vmatprep.subr.bf16.mxu0 %v4843_v3 }
 0x1da   : > { %4123 = vmatmul.mubr.f32.vlgmr.msra.gmra.mrb[18].mxu0 %v5473_v43 }
 0x1db   : > { %4636 = vmatpush3.bf16.msra.mxu0 %v5268_v18  ;;  %4157 = vmatprep.mubr.msk.f32.mxu0 %vm4844_vm0, %v4845_v13  ;;  %v2638_v18 = vld [vmem:[%s5940_s9 + $0x40] sm:$0xff] }
 0x1dc   : > { %4637 = vmatprep.subr.bf16.mxu0 %v4843_v3 }
 0x1df   : > { %4639 = vmatpush3.bf16.msra.mxu0 %v5282_v38  ;;  %v2639_v38 = vld [vmem:[%s5940_s9 + $0x48] sm:$0xff] }
 0x1e0   : > { %4640 = vmatprep.subr.bf16.mxu0 %v4843_v3 }
 0x1e3   : > { %4642 = vmatpush3.bf16.msra.mxu0 %v5296_v45  ;;  %v2678_v45 = vand.u32 4294901760, %v2638_v18 }
 0x1e4   : > { %4643 = vmatprep.subr.bf16.mxu0 %v4843_v3 }
 0x1e5   : > { %v5707_v0 = vsub.f32 %v2638_v18, %v2678_v45  ;;  %v2790_v18 = vsub.f32 %v5553_v56, %v2789_v6 }
 0x1e7   : > { %4645 = vmatpush3.bf16.msra.mxu0 %v5310_v52  ;;  %v2681_v52 = vand.u32 4294901760, %v2639_v38 }
 0x1e8   : > { %4646 = vmatprep.subr.bf16.mxu0 %v4843_v3 }
 0x1e9   : > { %v5709_v26 = vsub.f32 %v2639_v38, %v2681_v52  ;;  %v2797_v38 = vsub.f32 %v5555_v20, %v2796_v7 }
 0x1eb   : > { %4648 = vmatpush3.bf16.msra.mxu0 %v5320_v57  ;;  %v5679_v57 = vpack.c.bf16 %v2681_v52, %v2678_v45  ;;  %v4689_v45 = vpack.c.bf16 %v2784_v61, %v2777_v53  ;;  %v2791_v52 = vand.u32 4294901760, %v2790_v18  ;;  %v5960_v53 = vand.u32 4294901760, %v5725_v63 }
 0x1ec   : > { %4649 = vmatprep.subr.bf16.mxu0 %v4843_v3  ;;  %v5959_v61 = vand.u32 4294901760, %v5727_v1 }
 0x1ed   : > { %4672 = vmatpush3.bf16.msra.mxu1 %v5679_v57 }
 0x1ee   : > { %4673 = vmatprep.subr.bf16.mxu1 %v4843_v3 }
 0x1ef   : > { %4651 = vmatpush3.bf16.msra.mxu0 %v5330_v62  ;;  %v2640_v62 = vld [vmem:[%s5940_s9 + $0x50] sm:$0xff] }
 0x1f0   : > { %4652 = vmatprep.subr.bf16.mxu0 %v4843_v3  ;;  %v2684_v11 = vand.u32 4294901760, %v2640_v62 }
 0x1f2   : > { %v5711_v15 = vsub.f32 %v2640_v62, %v2684_v11  ;;  %v2798_v62 = vand.u32 4294901760, %v2797_v38  ;;  %v2846_v38 = vsub.f32 %v5725_v63, %v5960_v53 }
 0x1f3   : > { %4654 = vmatpush3.bf16.msra.mxu0 %v5358_v12  ;;  %v2687_v12 = vand.u32 4294901760, %v2641_v10 }
 0x1f4   : > { %4655 = vmatprep.subr.bf16.mxu0 %v4843_v3  ;;  %v2817_v19 = vand.u32 4294901760, %v5711_v15 }
 0x1f5   : > { %v5689_v16 = vpack.c.bf16 %v2687_v12, %v2684_v11  ;;  %v5713_v54 = vsub.f32 %v2641_v10, %v2687_v12  ;;  %v2803_v10 = vand.u32 4294901760, %v5707_v0  ;;  %v2810_v11 = vand.u32 4294901760, %v5709_v26 }
 0x1f6   : > { %v4692_v12 = vpack.c.bf16 %v2798_v62, %v2791_v52  ;;  %v2818_v42 = vsub.f32 %v5711_v15, %v2817_v19  ;;  %v2853_v52 = vsub.f32 %v5727_v1, %v5959_v61  ;;  %v2847_v62 = vand.u32 4294901760, %v2846_v38 }
 0x1f7   : > { %4657 = vmatpush3.bf16.msra.mxu0 %v5368_v23  ;;  %v2643_v23 = vld [vmem:[%s5940_s9 + $0x68] sm:$0xff]  ;;  %4675 = vmatpush3.bf16.msra.mxu1 %v5689_v16  ;;  %v2804_v17 = vsub.f32 %v5707_v0, %v2803_v10  ;;  %v5963_v37 = vand.u32 4294901760, %v5713_v54 }
 0x1f8   : > { %v2693_v14 = vand.u32 4294901760, %v2643_v23  ;;  %4676 = vmatprep.subr.bf16.mxu1 %v4843_v3  ;;  %v2819_v36 = vand.u32 4294901760, %v2818_v42  ;;  %v4713_v42 = vpack.c.bf16 %v5549_v29, %v5541_v59  ;;  %v5981_v29 = vand.u32 4294901760, %v5716_v49 }
 0x1f9   : > { %v2825_v58 = vsub.f32 %v5713_v54, %v5963_v37 }
 0x1fa   : > { %4158 = vmatmul.mubr.f32.vlgmr.msra.gmra.mrb[18].mxu0 %v5473_v43  ;;  %v5699_v43 = vpack.c.bf16 %v2693_v14, %v2690_v24  ;;  %v5718_v25 = vsub.f32 %v2643_v23, %v2693_v14  ;;  %v2811_v23 = vsub.f32 %v5709_v26, %v2810_v11  ;;  %v2805_v24 = vand.u32 4294901760, %v2804_v17 }
 0x1fb   : > { %v2826_v48 = vand.u32 4294901760, %v2825_v58  ;;  %v2854_v17 = vand.u32 4294901760, %v2853_v52  ;;  %v4716_v58 = vpack.c.bf16 %v5555_v20, %v5553_v56 }
 0x1fc   : > { %4678 = vmatpush3.bf16.msra.mxu1 %v5699_v43  ;;  %v2812_v14 = vand.u32 4294901760, %v2811_v23  ;;  %v5961_v39 = vand.u32 4294901760, %v5718_v25  ;;  %v4725_v30 = vpack.c.bf16 %v5718_v25, %v5716_v49  ;;  %v5982_v56 = vand.u32 4294901760, %v5718_v25 }
 0x1fd   : > { %4679 = vmatprep.subr.bf16.mxu1 %v4843_v3  ;;  %v4698_v41 = vpack.c.bf16 %v2826_v48, %v2819_v36  ;;  %v4704_v23 = vpack.c.bf16 %v2854_v17, %v2847_v62  ;;  %v4719_v36 = vpack.c.bf16 %v5709_v26, %v5707_v0  ;;  %v4722_v48 = vpack.c.bf16 %v5713_v54, %v5711_v15 }
 0x1fe   : > { %v4695_v9 = vpack.c.bf16 %v2812_v14, %v2805_v24  ;;  %v2839_v31 = vsub.f32 %v5718_v25, %v5961_v39  ;;  %v4707_v24 = vpack.c.bf16 %v5535_v8, %v5533_v2  ;;  %v4710_v14 = vpack.c.bf16 %v5539_v27, %v5537_v21 }
 0x1ff   : > { %v4761_v2 = vpack.c.bf16 %v2782_v47, %v2775_v46  ;;  %v4764_v8 = vpack.c.bf16 %v2796_v7, %v2789_v6  ;;  %v4767_v21 = vpack.c.bf16 %v2810_v11, %v2803_v10  ;;  %v5980_v27 = vand.u32 4294901760, %v5713_v54 }
 0x200   : > { %4681 = vmatpush3.bf16.msra.mxu1 %v5723_v55  ;;  %v2840_v5 = vand.u32 4294901760, %v2839_v31  ;;  %v4728_v31 = vpack.c.bf16 %v5727_v1, %v5725_v63  ;;  %v4773_v20 = vpack.c.bf16 %v5982_v56, %v5981_v29  ;;  %v5983_v0 = vand.u32 4294901760, %v5725_v63 }
 0x201   : > { %4682 = vmatprep.subr.bf16.mxu1 %v4843_v3  ;;  %v4770_v59 = vpack.c.bf16 %v5980_v27, %v2817_v19  ;;  %v5984_v26 = vand.u32 4294901760, %v5727_v1 }
 0x202   : > { %v4701_v18 = vpack.c.bf16 %v2840_v5, %v2833_v4  ;;  %v3382_v4 = vld [vmem:[%s5939_s8] ss:$0 sm:$0xff] }
 0x2cd   : > { %v2624_v5 = vpop.f32.mrb[18].mxu0 }
 0x2ce   : > { %v4802_v38 = vadd.f32 %v3382_v4, %v2624_v5  ;;  %v4159_v52 = vpop.f32.mrb[19].mxu0 }
 0x2d0   : > { %v2628_v62 = vmul.f32 0.1, %v4802_v38 }
 0x2d2   : > { %v2629_v17 = vmax.f32 %v4802_v38, %v2628_v62 }
 0x2d4   : > { %v5816_v61 = vand.u32 4294901760, %v2629_v17 }
 0x2d6   : > { %v2735_v53 = vsub.f32 %v2629_v17, %v5816_v61 }
 0x2d8   : > { %v2736_v39 = vand.u32 4294901760, %v2735_v53 }
 0x2da   : > { %v2737_v22 = vsub.f32 %v2735_v53, %v2736_v39 }
 0x2dc   : > { %v2738_v37 = vand.u32 4294901760, %v2737_v22 }
 0x2de   : > { %4193 = vmatmul.mubr.f32.vlgmr.msra.gmra.mrb[18].mxu1 %v2738_v37 }
 0x2df   : > { %4684 = vmatpush3.bf16.msra.mxu1 %v5745_v28  ;;  %4227 = vmatprep.mubr.msk.f32.mxu1 %vm4844_vm0, %v4845_v13  ;;  %v4755_v28 = vpack.c.bf16 %v2754_v32, %v2747_v51  ;;  %v4776_v51 = vpack.c.bf16 %v5984_v26, %v5983_v0 }
 0x2e0   : > { %4685 = vmatprep.subr.bf16.mxu1 %v4843_v3 }
 0x2e3   : > { %4687 = vmatpush3.bf16.msra.mxu1 %v5749_v40  ;;  %v4758_v40 = vpack.c.bf16 %v2768_v34, %v2761_v33 }
 0x2e4   : > { %4688 = vmatprep.subr.bf16.mxu1 %v4843_v3 }
 0x2e7   : > { %4690 = vmatpush3.bf16.msra.mxu1 %v4689_v45 }
 0x2e8   : > { %4691 = vmatprep.subr.bf16.mxu1 %v4843_v3 }
 0x2eb   : > { %4693 = vmatpush3.bf16.msra.mxu1 %v4692_v12 }
 0x2ec   : > { %4694 = vmatprep.subr.bf16.mxu1 %v4843_v3 }
 0x2ef   : > { %4696 = vmatpush3.bf16.msra.mxu1 %v4695_v9 }
 0x2f0   : > { %4697 = vmatprep.subr.bf16.mxu1 %v4843_v3 }
 0x2f3   : > { %4699 = vmatpush3.bf16.msra.mxu1 %v4698_v41 }
 0x2f4   : > { %4700 = vmatprep.subr.bf16.mxu1 %v4843_v3 }
 0x2f7   : > { %4702 = vmatpush3.bf16.msra.mxu1 %v4701_v18 }
 0x2f8   : > { %4703 = vmatprep.subr.bf16.mxu1 %v4843_v3 }
 0x2fb   : > { %4705 = vmatpush3.bf16.msra.mxu1 %v4704_v23 }
 0x2fc   : > { %4706 = vmatprep.subr.bf16.mxu1 %v4843_v3 }
 0x2fe   : > { %4228 = vmatmul.mubr.f32.vlgmr.msra.gmra.mrb[18].mxu1 %v5816_v61 }
 0x2ff   : > { %4708 = vmatpush3.bf16.msra.mxu1 %v4707_v24  ;;  %4262 = vmatprep.mubr.msk.f32.mxu1 %vm4844_vm0, %v4845_v13 }
 0x300   : > { %4709 = vmatprep.subr.bf16.mxu1 %v4843_v3 }
 0x303   : > { %4711 = vmatpush3.bf16.msra.mxu1 %v4710_v14 }
 0x304   : > { %4712 = vmatprep.subr.bf16.mxu1 %v4843_v3 }
 0x307   : > { %4714 = vmatpush3.bf16.msra.mxu1 %v4713_v42 }
 0x308   : > { %4715 = vmatprep.subr.bf16.mxu1 %v4843_v3 }
 0x30b   : > { %4717 = vmatpush3.bf16.msra.mxu1 %v4716_v58 }
 0x30c   : > { %4718 = vmatprep.subr.bf16.mxu1 %v4843_v3 }
 0x30f   : > { %4720 = vmatpush3.bf16.msra.mxu1 %v4719_v36 }
 0x310   : > { %4721 = vmatprep.subr.bf16.mxu1 %v4843_v3 }
 0x313   : > { %4723 = vmatpush3.bf16.msra.mxu1 %v4722_v48 }
 0x314   : > { %4724 = vmatprep.subr.bf16.mxu1 %v4843_v3 }
 0x317   : > { %4726 = vmatpush3.bf16.msra.mxu1 %v4725_v30 }
 0x318   : > { %4727 = vmatprep.subr.bf16.mxu1 %v4843_v3 }
 0x31b   : > { %4729 = vmatpush3.bf16.msra.mxu1 %v4728_v31 }
 0x31c   : > { %4730 = vmatprep.subr.bf16.mxu1 %v4843_v3 }
 0x31e   : > { %4263 = vmatmul.mubr.f32.vlgmr.msra.gmra.mrb[18].mxu1 %v2735_v53 }
 0x31f   : > { %4732 = vmatpush3.bf16.msra.mxu1 %v5531_v60  ;;  %4297 = vmatprep.mubr.msk.f32.mxu1 %vm4844_vm0, %v4845_v13 }
 0x320   : > { %4733 = vmatprep.subr.bf16.mxu1 %v4843_v3 }
 0x323   : > { %4735 = vmatpush3.bf16.msra.mxu1 %v5547_v50 }
 0x324   : > { %4736 = vmatprep.subr.bf16.mxu1 %v4843_v3 }
 0x327   : > { %4738 = vmatpush3.bf16.msra.mxu1 %v5561_v44 }
 0x328   : > { %4739 = vmatprep.subr.bf16.mxu1 %v4843_v3 }
 0x32b   : > { %4741 = vmatpush3.bf16.msra.mxu1 %v5569_v35 }
 0x32c   : > { %4742 = vmatprep.subr.bf16.mxu1 %v4843_v3 }
 0x32f   : > { %4744 = vmatpush3.bf16.msra.mxu1 %v5679_v57 }
 0x330   : > { %4745 = vmatprep.subr.bf16.mxu1 %v4843_v3 }
 0x333   : > { %4747 = vmatpush3.bf16.msra.mxu1 %v5689_v16 }
 0x334   : > { %4748 = vmatprep.subr.bf16.mxu1 %v4843_v3 }
 0x337   : > { %4750 = vmatpush3.bf16.msra.mxu1 %v5699_v43 }
 0x338   : > { %4751 = vmatprep.subr.bf16.mxu1 %v4843_v3 }
 0x33b   : > { %4753 = vmatpush3.bf16.msra.mxu1 %v5723_v55 }
 0x33c   : > { %4754 = vmatprep.subr.bf16.mxu1 %v4843_v3 }
 0x33e   : > { %4298 = vmatmul.mubr.f32.vlgmr.msra.gmra.mrb[18].mxu1 %v2736_v39 }
 0x33f   : > { %4756 = vmatpush3.bf16.msra.mxu1 %v4755_v28  ;;  %4332 = vmatprep.mubr.msk.f32.mxu1 %vm4844_vm0, %v4845_v13 }
 0x340   : > { %4757 = vmatprep.subr.bf16.mxu1 %v4843_v3 }
 0x343   : > { %4759 = vmatpush3.bf16.msra.mxu1 %v4758_v40 }
 0x344   : > { %4760 = vmatprep.subr.bf16.mxu1 %v4843_v3 }
 0x347   : > { %4762 = vmatpush3.bf16.msra.mxu1 %v4761_v2 }
 0x348   : > { %4763 = vmatprep.subr.bf16.mxu1 %v4843_v3 }
 0x34b   : > { %4765 = vmatpush3.bf16.msra.mxu1 %v4764_v8 }
 0x34c   : > { %4766 = vmatprep.subr.bf16.mxu1 %v4843_v3 }
 0x34f   : > { %4768 = vmatpush3.bf16.msra.mxu1 %v4767_v21 }
 0x350   : > { %4769 = vmatprep.subr.bf16.mxu1 %v4843_v3 }
 0x353   : > { %4771 = vmatpush3.bf16.msra.mxu1 %v4770_v59 }
 0x354   : > { %4772 = vmatprep.subr.bf16.mxu1 %v4843_v3 }
 0x357   : > { %4774 = vmatpush3.bf16.msra.mxu1 %v4773_v20 }
 0x358   : > { %4775 = vmatprep.subr.bf16.mxu1 %v4843_v3 }
 0x35b   : > { %4777 = vmatpush3.bf16.msra.mxu1 %v4776_v51 }
 0x35c   : > { %4778 = vmatprep.subr.bf16.mxu1 %v4843_v3 }
 0x35e   : > { %4333 = vmatmul.mubr.f32.vlgmr.msra.gmra.mrb[18].mxu1 %v5816_v61 }
 0x35f   : > { %4780 = vmatpush3.bf16.msra.mxu1 %v5531_v60  ;;  %4367 = vmatprep.mubr.msk.f32.mxu1 %vm4844_vm0, %v4845_v13  ;;  %v3383_v13 = vld [vmem:[%s5941_s10] ss:$0 sm:$0xff] }
 0x360   : > { %4781 = vmatprep.subr.bf16.mxu1 %v4843_v3 }
 0x363   : > { %4783 = vmatpush3.bf16.msra.mxu1 %v5547_v50 }
 0x364   : > { %4784 = vmatprep.subr.bf16.mxu1 %v4843_v3 }
 0x367   : > { %4786 = vmatpush3.bf16.msra.mxu1 %v5561_v44 }
 0x368   : > { %4787 = vmatprep.subr.bf16.mxu1 %v4843_v3 }
 0x36b   : > { %4789 = vmatpush3.bf16.msra.mxu1 %v5569_v35 }
 0x36c   : > { %4790 = vmatprep.subr.bf16.mxu1 %v4843_v3 }
 0x36f   : > { %4792 = vmatpush3.bf16.msra.mxu1 %v5679_v57 }
 0x370   : > { %4793 = vmatprep.subr.bf16.mxu1 %v4843_v3 }
 0x373   : > { %4795 = vmatpush3.bf16.msra.mxu1 %v5689_v16 }
 0x374   : > { %4796 = vmatprep.subr.bf16.mxu1 %v4843_v3 }
 0x377   : > { %4798 = vmatpush3.bf16.msra.mxu1 %v5699_v43 }
 0x378   : > { %4799 = vmatprep.subr.bf16.mxu1 %v4843_v3 }
 0x37b   : > { %4801 = vmatpush3.bf16.msra.mxu1 %v5723_v55 }
 0x37e   : > { %4368 = vmatmul.mubr.f32.vlgmr.msra.gmra.mrb[18].mxu1 %v5816_v61 }
 0x451   : > { %v3290_v60 = vpop.f32.mrb[18].mxu1 }
 0x452   : > { %v4803_v50 = vadd.f32 %v3383_v13, %v3290_v60  ;;  %v4369_v44 = vpop.f32.mrb[19].mxu1 }
 0x454   : > { %3294 = vst [vmem:[%s415_s30] sm:$0xff] %v4803_v50 }
 0x455 PF: > { %s21_s17 = sadd.s32 1, %s4841_s17  }
 0x456   : > { %p18_p4 = scmp.ge.s32.totalorder %s21_s17, 4  }
 0x458   :  { %20 = sbr.rel (!%p18_p4) target bundleno = 1 (0x1), region = 100 }

</bundles_post_ra>
